<compile_context>
chip_gen: v7x
topology: tpu7x:2x2x1
jax: 0.10.0
libtpu: 0.0.40
codegen_flags: <defaults>
</compile_context>

<pallas_src>
import functools

import jax
import jax.numpy as jnp
from jax import lax
from jax.experimental import pallas as pl
from jax.experimental.pallas import tpu as pltpu


# ----------------------------------------------------------------------------
# Pallas kernel: fused 3x3 conv (pad=1, stride=1) + GroupNorm + ReLU, per batch
# ----------------------------------------------------------------------------
def _conv_gn_relu_kernel(xpad_ref, w_ref, b_ref, gamma_ref, beta_ref,
                         gmat_ref, gmatt_ref, out_ref, slab_ref, *, cpg, eps):
    # xpad_ref : (1, H+2, W+2, Cin)  padded NHWC input tile, f32 (Cin % 128 == 0)
    # w_ref    : (9*Cin, Cout)       im2col conv weights, bf16
    # b_ref    : (1, Cout)           conv bias, f32
    # gamma_ref: (1, Cout)           GN scale, f32
    # beta_ref : (1, Cout)           GN shift, f32
    # gmat_ref : (Cout, G)           channel -> group one-hot membership, f32
    # gmatt_ref: (G, Cout)           its transpose (broadcast back), f32
    # out_ref  : (1, H*W, Cout)      lane-dense output, f32
    # slab_ref : (H*W, 9*Cin)        VMEM scratch for the im2col slab, bf16
    _, Hp, Wp, Cin = xpad_ref.shape
    H, W = Hp - 2, Wp - 2
    Cout = out_ref.shape[-1]

    # Build the im2col slab once: tap (dy, dx) goes to lane-aligned column block
    # [t*Cin, (t+1)*Cin).  Each store is a dense (H*W, Cin) bf16 store.
    for t, (dy, dx) in enumerate((dy, dx) for dy in range(3) for dx in range(3)):
        tap = xpad_ref[0, dy:dy + H, dx:dx + W, :]          # (H, W, Cin) f32
        slab_ref[:, t * Cin:(t + 1) * Cin] = (
            tap.reshape(H * W, Cin).astype(slab_ref.dtype))

    # Single MXU matmul over K = 9*Cin, bf16 operands, f32 accumulation.
    acc = jnp.dot(slab_ref[...], w_ref[...],
                  preferred_element_type=jnp.float32)       # (H*W, Cout)
    acc = acc + b_ref[...]

    # GroupNorm statistics: per-channel sums -> per-group sums via the small
    # (Cout, G) membership matrix, broadcast back with its transpose.
    s = jnp.sum(acc, axis=0, keepdims=True)                 # (1, Cout)
    ssq = jnp.sum(acc * acc, axis=0, keepdims=True)         # (1, Cout)
    denom = float(H * W * cpg)
    mean = jnp.dot(jnp.dot(s, gmat_ref[...], preferred_element_type=jnp.float32),
                   gmatt_ref[...], preferred_element_type=jnp.float32) / denom
    msq = jnp.dot(jnp.dot(ssq, gmat_ref[...], preferred_element_type=jnp.float32),
                  gmatt_ref[...], preferred_element_type=jnp.float32) / denom
    var = msq - mean * mean
    inv = lax.rsqrt(var + eps)                              # EUP

    y = (acc - mean) * inv * gamma_ref[...] + beta_ref[...]
    y = jnp.maximum(y, 0.0)

    # Lane-dense store: last dim Cout (multiple of 128 at decoder widths).
    out_ref[...] = y.reshape(1, H * W, Cout).astype(out_ref.dtype)


def conv_gn_relu_pallas(x_nhwc, w_hwio, b, gamma, beta, num_groups, eps=1e-5):
    N, H, W, Cin = x_nhwc.shape
    Cout = w_hwio.shape[-1]
    assert Cout % num_groups == 0, (Cout, num_groups)
    cpg = Cout // num_groups

    # Pad Cin up to a lane multiple so every im2col column block is 128-aligned
    # inside the kernel (no-op when Cin is already a multiple of 128).
    Cin_p = ((Cin + 127) // 128) * 128
    xpad = jnp.pad(x_nhwc, ((0, 0), (1, 1), (1, 1), (0, Cin_p - Cin)))
    w_p = jnp.pad(w_hwio, ((0, 0), (0, 0), (0, Cin_p - Cin), (0, 0)))
    w2d = w_p.reshape(9 * Cin_p, Cout).astype(jnp.bfloat16)  # im2col weights

    # Channel -> group membership matrix (Cout, G) and its transpose.
    gmat = jnp.kron(jnp.eye(num_groups, dtype=jnp.float32),
                    jnp.ones((cpg, 1), jnp.float32))          # (Cout, G)
    gmat_t = gmat.T                                           # (G, Cout)

    kernel = functools.partial(_conv_gn_relu_kernel, cpg=cpg, eps=eps)
    Hp, Wp, HW = H + 2, W + 2, H * W

    flops = 2 * N * HW * (9 * Cin_p) * Cout
    bytes_accessed = (xpad.size * 4 + w2d.size * 2 + N * HW * Cout * 4
                      + 3 * Cout * 4 + 2 * Cout * num_groups * 4)

    out = pl.pallas_call(
        kernel,
        out_shape=jax.ShapeDtypeStruct((N, HW, Cout), jnp.float32),
        grid=(N,),
        in_specs=[
            pl.BlockSpec((1, Hp, Wp, Cin_p), lambda n: (n, 0, 0, 0)),
            pl.BlockSpec((9 * Cin_p, Cout), lambda n: (0, 0)),
            pl.BlockSpec((1, Cout), lambda n: (0, 0)),
            pl.BlockSpec((1, Cout), lambda n: (0, 0)),
            pl.BlockSpec((1, Cout), lambda n: (0, 0)),
            pl.BlockSpec((Cout, num_groups), lambda n: (0, 0)),
            pl.BlockSpec((num_groups, Cout), lambda n: (0, 0)),
        ],
        out_specs=pl.BlockSpec((1, HW, Cout), lambda n: (n, 0, 0)),
        scratch_shapes=[pltpu.VMEM((HW, 9 * Cin_p), jnp.bfloat16)],
        compiler_params=pltpu.CompilerParams(
            dimension_semantics=("parallel",)),
        cost_estimate=pl.CostEstimate(
            flops=flops, transcendentals=0, bytes_accessed=bytes_accessed),
    )(xpad, w2d, b.reshape(1, Cout).astype(jnp.float32),
      gamma.reshape(1, Cout).astype(jnp.float32),
      beta.reshape(1, Cout).astype(jnp.float32), gmat, gmat_t)

    return out.reshape(N, H, W, Cout)


# ----------------------------------------------------------------------------
# Glue: bilinear upsample as two small interpolation matmuls (NHWC-producing)
# ----------------------------------------------------------------------------
def _interp_matrix(n_in, n_out, align_corners=True):
    if n_in == 1:
        return jnp.ones((n_out, 1), jnp.float32)
    o = jnp.arange(n_out, dtype=jnp.float32)
    if align_corners:
        src = (jnp.zeros((n_out,), jnp.float32) if n_out == 1
               else o * (n_in - 1) / (n_out - 1))
    else:
        src = jnp.maximum((o + 0.5) * (n_in / n_out) - 0.5, 0.0)
    i0 = jnp.clip(jnp.floor(src).astype(jnp.int32), 0, n_in - 1)
    i1 = jnp.minimum(i0 + 1, n_in - 1)
    frac = src - i0.astype(jnp.float32)
    oh0 = jax.nn.one_hot(i0, n_in, dtype=jnp.float32)
    oh1 = jax.nn.one_hot(i1, n_in, dtype=jnp.float32)
    return (1.0 - frac)[:, None] * oh0 + frac[:, None] * oh1


def upsample_gn_forward(x, skip_x, w_oihw, b, gamma, beta, num_groups=32,
                        align_corners=True):
    """UpSampleGN forward. x, skip_x: NCHW (PyTorch layout). Returns NCHW."""
    _, _, Hi, Wi = x.shape
    _, _, Ho, Wo = skip_x.shape
    Rh = _interp_matrix(Hi, Ho, align_corners)
    Rw = _interp_matrix(Wi, Wo, align_corners)
    # Bilinear upsample folded with the NCHW -> NHWC layout change (one einsum).
    x_up = jnp.einsum('nchw,oh,pw->nopc', x, Rh, Rw)          # (N, Ho, Wo, Cx)
    skip = jnp.transpose(skip_x, (0, 2, 3, 1))                # (N, Ho, Wo, Cs)
    x_cat = jnp.concatenate([x_up, skip], axis=-1)            # NHWC
    w_hwio = jnp.transpose(w_oihw, (2, 3, 1, 0))              # OIHW -> HWIO
    out_nhwc = conv_gn_relu_pallas(x_cat, w_hwio, b, gamma, beta, num_groups)
    return jnp.transpose(out_nhwc, (0, 3, 1, 2))              # back to NCHW


# ----------------------------------------------------------------------------
# Pure-JAX reference (for correctness check)
# ----------------------------------------------------------------------------
def upsample_gn_reference(x, skip_x, w_oihw, b, gamma, beta, num_groups=32,
                          eps=1e-5, align_corners=True):
    _, _, Hi, Wi = x.shape
    _, _, Ho, Wo = skip_x.shape
    Rh = _interp_matrix(Hi, Ho, align_corners)
    Rw = _interp_matrix(Wi, Wo, align_corners)
    x_up = jnp.einsum('nchw,oh,pw->ncop', x, Rh, Rw)
    x_cat = jnp.concatenate([x_up, skip_x], axis=1)
    y = lax.conv_general_dilated(
        x_cat, w_oihw, window_strides=(1, 1), padding=((1, 1), (1, 1)),
        dimension_numbers=('NCHW', 'OIHW', 'NCHW')) + b.reshape(1, -1, 1, 1)
    N, C, H, W = y.shape
    yr = y.reshape(N, num_groups, C // num_groups, H, W)
    mean = yr.mean(axis=(2, 3, 4), keepdims=True)
    var = yr.var(axis=(2, 3, 4), keepdims=True)
    yn = ((yr - mean) / jnp.sqrt(var + eps)).reshape(N, C, H, W)
    return jnp.maximum(yn * gamma.reshape(1, -1, 1, 1) +
                       beta.reshape(1, -1, 1, 1), 0.0)


# ----------------------------------------------------------------------------
if __name__ == "__main__":
    # Small-but-representative shapes: real decoder widths are 512/1024 (both
    # multiples of 128); here Cin = 64 + 64 = 128, Cout = 128, 32 groups.
    N = 2
    Cx, Cs = 64, 64
    Hi, Wi, Ho, Wo = 8, 8, 16, 16
    Cin, Cout, G = Cx + Cs, 128, 32

    key = jax.random.PRNGKey(0)
    k1, k2, k3, k4, k5, k6 = jax.random.split(key, 6)
    x = jax.random.normal(k1, (N, Cx, Hi, Wi), jnp.float32)
    skip_x = jax.random.normal(k2, (N, Cs, Ho, Wo), jnp.float32)

    # Synthetic parameters in PyTorch conventions (OIHW weight, 1-D bias/affine).
    w_oihw = jax.random.normal(k3, (Cout, Cin, 3, 3), jnp.float32) * 0.05
    b = jax.random.normal(k4, (Cout,), jnp.float32) * 0.05
    gamma = 1.0 + 0.1 * jax.random.normal(k5, (Cout,), jnp.float32)
    beta = 0.1 * jax.random.normal(k6, (Cout,), jnp.float32)

    # DSINEDecoder instantiates UpSampleGN with align_corners=False.
    fwd = jax.jit(functools.partial(upsample_gn_forward,
                                    num_groups=G, align_corners=False))
    out = jax.block_until_ready(fwd(x, skip_x, w_oihw, b, gamma, beta))

    ref = upsample_gn_reference(x, skip_x, w_oihw, b, gamma, beta,
                                num_groups=G, align_corners=False)
    ref = jax.block_until_ready(ref)

    assert out.shape == (N, Cout, Ho, Wo), out.shape
    max_err = float(jnp.max(jnp.abs(out - ref)))
    mean_err = float(jnp.mean(jnp.abs(out - ref)))
    assert jnp.allclose(out, ref, atol=5e-2, rtol=5e-2), (max_err, mean_err)
    assert mean_err < 5e-3, mean_err
    print("KERNEL_OK")
</pallas_src>

<mosaic_0001>
module attributes {stable_mosaic.version = 11 : i64} {
  func.func @_conv_gn_relu_kernel(%arg0: i32, %arg1: memref<1x18x18x128xf32, #tpu.memory_space<vmem>>, %arg2: memref<1152x128xbf16, #tpu.memory_space<vmem>>, %arg3: memref<1x128xf32, #tpu.memory_space<vmem>>, %arg4: memref<1x128xf32, #tpu.memory_space<vmem>>, %arg5: memref<1x128xf32, #tpu.memory_space<vmem>>, %arg6: memref<128x32xf32, #tpu.memory_space<vmem>>, %arg7: memref<32x128xf32, #tpu.memory_space<vmem>>, %arg8: memref<1x256x128xf32, #tpu.memory_space<vmem>>, %arg9: memref<256x1152xbf16, #tpu.memory_space<vmem>>) attributes {dimension_semantics = [#tpu.dimension_semantics<parallel>], iteration_bounds = array<i64: 2>, scalar_prefetch = 0 : i64, scratch_operands = 1 : i64, tpu.core_type = #tpu.core_type<tc>, window_params = [{transform_indices = @transform_0, window_bounds = array<i64: 1, 18, 18, 128>}, {pipeline_mode = #tpu.pipeline_mode<synchronous>, transform_indices = @transform_1, window_bounds = array<i64: 1152, 128>}, {pipeline_mode = #tpu.pipeline_mode<synchronous>, transform_indices = @transform_2, window_bounds = array<i64: 1, 128>}, {pipeline_mode = #tpu.pipeline_mode<synchronous>, transform_indices = @transform_3, window_bounds = array<i64: 1, 128>}, {pipeline_mode = #tpu.pipeline_mode<synchronous>, transform_indices = @transform_4, window_bounds = array<i64: 1, 128>}, {pipeline_mode = #tpu.pipeline_mode<synchronous>, transform_indices = @transform_5, window_bounds = array<i64: 128, 32>}, {pipeline_mode = #tpu.pipeline_mode<synchronous>, transform_indices = @transform_6, window_bounds = array<i64: 32, 128>}, {transform_indices = @transform_7, window_bounds = array<i64: 1, 256, 128>}]} {
    %c0 = arith.constant 0 : index
    %c0_0 = arith.constant 0 : index
    %c0_1 = arith.constant 0 : index
    %c0_2 = arith.constant 0 : index
    %0 = vector.load %arg1[%c0, %c0_0, %c0_1, %c0_2] : memref<1x18x18x128xf32, #tpu.memory_space<vmem>>, vector<1x16x16x128xf32>
    %1 = vector.shape_cast %0 : vector<1x16x16x128xf32> to vector<16x16x128xf32>
    %2 = vector.shape_cast %1 : vector<16x16x128xf32> to vector<256x128xf32>
    %3 = arith.truncf %2 : vector<256x128xf32> to vector<256x128xbf16>
    %c0_3 = arith.constant 0 : index
    %c0_4 = arith.constant 0 : index
    %4 = vector.load %arg9[%c0_3, %c0_4] : memref<256x1152xbf16, #tpu.memory_space<vmem>>, vector<256x128xbf16>
    tpu.vector_store %arg9[%c0_3, %c0_4], %3 {strides = array<i32>} : memref<256x1152xbf16, #tpu.memory_space<vmem>>, vector<256x128xbf16>,
    %c0_5 = arith.constant 0 : index
    %c0_6 = arith.constant 0 : index
    %c1 = arith.constant 1 : index
    %c0_7 = arith.constant 0 : index
    %5 = vector.load %arg1[%c0_5, %c0_6, %c1, %c0_7] : memref<1x18x18x128xf32, #tpu.memory_space<vmem>>, vector<1x16x16x128xf32>
    %6 = vector.shape_cast %5 : vector<1x16x16x128xf32> to vector<16x16x128xf32>
    %7 = vector.shape_cast %6 : vector<16x16x128xf32> to vector<256x128xf32>
    %8 = arith.truncf %7 : vector<256x128xf32> to vector<256x128xbf16>
    %c0_8 = arith.constant 0 : index
    %c128 = arith.constant 128 : index
    %9 = vector.load %arg9[%c0_8, %c128] : memref<256x1152xbf16, #tpu.memory_space<vmem>>, vector<256x128xbf16>
    tpu.vector_store %arg9[%c0_8, %c128], %8 {strides = array<i32>} : memref<256x1152xbf16, #tpu.memory_space<vmem>>, vector<256x128xbf16>,
    %c0_9 = arith.constant 0 : index
    %c0_10 = arith.constant 0 : index
    %c2 = arith.constant 2 : index
    %c0_11 = arith.constant 0 : index
    %10 = vector.load %arg1[%c0_9, %c0_10, %c2, %c0_11] : memref<1x18x18x128xf32, #tpu.memory_space<vmem>>, vector<1x16x16x128xf32>
    %11 = vector.shape_cast %10 : vector<1x16x16x128xf32> to vector<16x16x128xf32>
    %12 = vector.shape_cast %11 : vector<16x16x128xf32> to vector<256x128xf32>
    %13 = arith.truncf %12 : vector<256x128xf32> to vector<256x128xbf16>
    %c0_12 = arith.constant 0 : index
    %c256 = arith.constant 256 : index
    %14 = vector.load %arg9[%c0_12, %c256] : memref<256x1152xbf16, #tpu.memory_space<vmem>>, vector<256x128xbf16>
    tpu.vector_store %arg9[%c0_12, %c256], %13 {strides = array<i32>} : memref<256x1152xbf16, #tpu.memory_space<vmem>>, vector<256x128xbf16>,
    %c0_13 = arith.constant 0 : index
    %c1_14 = arith.constant 1 : index
    %c0_15 = arith.constant 0 : index
    %c0_16 = arith.constant 0 : index
    %15 = vector.load %arg1[%c0_13, %c1_14, %c0_15, %c0_16] : memref<1x18x18x128xf32, #tpu.memory_space<vmem>>, vector<1x16x16x128xf32>
    %16 = vector.shape_cast %15 : vector<1x16x16x128xf32> to vector<16x16x128xf32>
    %17 = vector.shape_cast %16 : vector<16x16x128xf32> to vector<256x128xf32>
    %18 = arith.truncf %17 : vector<256x128xf32> to vector<256x128xbf16>
    %c0_17 = arith.constant 0 : index
    %c384 = arith.constant 384 : index
    %19 = vector.load %arg9[%c0_17, %c384] : memref<256x1152xbf16, #tpu.memory_space<vmem>>, vector<256x128xbf16>
    tpu.vector_store %arg9[%c0_17, %c384], %18 {strides = array<i32>} : memref<256x1152xbf16, #tpu.memory_space<vmem>>, vector<256x128xbf16>,
    %c0_18 = arith.constant 0 : index
    %c1_19 = arith.constant 1 : index
    %c1_20 = arith.constant 1 : index
    %c0_21 = arith.constant 0 : index
    %20 = vector.load %arg1[%c0_18, %c1_19, %c1_20, %c0_21] : memref<1x18x18x128xf32, #tpu.memory_space<vmem>>, vector<1x16x16x128xf32>
    %21 = vector.shape_cast %20 : vector<1x16x16x128xf32> to vector<16x16x128xf32>
    %22 = vector.shape_cast %21 : vector<16x16x128xf32> to vector<256x128xf32>
    %23 = arith.truncf %22 : vector<256x128xf32> to vector<256x128xbf16>
    %c0_22 = arith.constant 0 : index
    %c512 = arith.constant 512 : index
    %24 = vector.load %arg9[%c0_22, %c512] : memref<256x1152xbf16, #tpu.memory_space<vmem>>, vector<256x128xbf16>
    tpu.vector_store %arg9[%c0_22, %c512], %23 {strides = array<i32>} : memref<256x1152xbf16, #tpu.memory_space<vmem>>, vector<256x128xbf16>,
    %c0_23 = arith.constant 0 : index
    %c1_24 = arith.constant 1 : index
    %c2_25 = arith.constant 2 : index
    %c0_26 = arith.constant 0 : index
    %25 = vector.load %arg1[%c0_23, %c1_24, %c2_25, %c0_26] : memref<1x18x18x128xf32, #tpu.memory_space<vmem>>, vector<1x16x16x128xf32>
    %26 = vector.shape_cast %25 : vector<1x16x16x128xf32> to vector<16x16x128xf32>
    %27 = vector.shape_cast %26 : vector<16x16x128xf32> to vector<256x128xf32>
    %28 = arith.truncf %27 : vector<256x128xf32> to vector<256x128xbf16>
    %c0_27 = arith.constant 0 : index
    %c640 = arith.constant 640 : index
    %29 = vector.load %arg9[%c0_27, %c640] : memref<256x1152xbf16, #tpu.memory_space<vmem>>, vector<256x128xbf16>
    tpu.vector_store %arg9[%c0_27, %c640], %28 {strides = array<i32>} : memref<256x1152xbf16, #tpu.memory_space<vmem>>, vector<256x128xbf16>,
    %c0_28 = arith.constant 0 : index
    %c2_29 = arith.constant 2 : index
    %c0_30 = arith.constant 0 : index
    %c0_31 = arith.constant 0 : index
    %30 = vector.load %arg1[%c0_28, %c2_29, %c0_30, %c0_31] : memref<1x18x18x128xf32, #tpu.memory_space<vmem>>, vector<1x16x16x128xf32>
    %31 = vector.shape_cast %30 : vector<1x16x16x128xf32> to vector<16x16x128xf32>
    %32 = vector.shape_cast %31 : vector<16x16x128xf32> to vector<256x128xf32>
    %33 = arith.truncf %32 : vector<256x128xf32> to vector<256x128xbf16>
    %c0_32 = arith.constant 0 : index
    %c768 = arith.constant 768 : index
    %34 = vector.load %arg9[%c0_32, %c768] : memref<256x1152xbf16, #tpu.memory_space<vmem>>, vector<256x128xbf16>
    tpu.vector_store %arg9[%c0_32, %c768], %33 {strides = array<i32>} : memref<256x1152xbf16, #tpu.memory_space<vmem>>, vector<256x128xbf16>,
    %c0_33 = arith.constant 0 : index
    %c2_34 = arith.constant 2 : index
    %c1_35 = arith.constant 1 : index
    %c0_36 = arith.constant 0 : index
    %35 = vector.load %arg1[%c0_33, %c2_34, %c1_35, %c0_36] : memref<1x18x18x128xf32, #tpu.memory_space<vmem>>, vector<1x16x16x128xf32>
    %36 = vector.shape_cast %35 : vector<1x16x16x128xf32> to vector<16x16x128xf32>
    %37 = vector.shape_cast %36 : vector<16x16x128xf32> to vector<256x128xf32>
    %38 = arith.truncf %37 : vector<256x128xf32> to vector<256x128xbf16>
    %c0_37 = arith.constant 0 : index
    %c896 = arith.constant 896 : index
    %39 = vector.load %arg9[%c0_37, %c896] : memref<256x1152xbf16, #tpu.memory_space<vmem>>, vector<256x128xbf16>
    tpu.vector_store %arg9[%c0_37, %c896], %38 {strides = array<i32>} : memref<256x1152xbf16, #tpu.memory_space<vmem>>, vector<256x128xbf16>,
    %c0_38 = arith.constant 0 : index
    %c2_39 = arith.constant 2 : index
    %c2_40 = arith.constant 2 : index
    %c0_41 = arith.constant 0 : index
    %40 = vector.load %arg1[%c0_38, %c2_39, %c2_40, %c0_41] : memref<1x18x18x128xf32, #tpu.memory_space<vmem>>, vector<1x16x16x128xf32>
    %41 = vector.shape_cast %40 : vector<1x16x16x128xf32> to vector<16x16x128xf32>
    %42 = vector.shape_cast %41 : vector<16x16x128xf32> to vector<256x128xf32>
    %43 = arith.truncf %42 : vector<256x128xf32> to vector<256x128xbf16>
    %c0_42 = arith.constant 0 : index
    %c1024 = arith.constant 1024 : index
    %44 = vector.load %arg9[%c0_42, %c1024] : memref<256x1152xbf16, #tpu.memory_space<vmem>>, vector<256x128xbf16>
    tpu.vector_store %arg9[%c0_42, %c1024], %43 {strides = array<i32>} : memref<256x1152xbf16, #tpu.memory_space<vmem>>, vector<256x128xbf16>,
    %c0_43 = arith.constant 0 : index
    %c0_44 = arith.constant 0 : index
    %45 = vector.load %arg9[%c0_43, %c0_44] : memref<256x1152xbf16, #tpu.memory_space<vmem>>, vector<256x1152xbf16>
    %c0_45 = arith.constant 0 : index
    %c0_46 = arith.constant 0 : index
    %46 = vector.load %arg2[%c0_45, %c0_46] : memref<1152x128xbf16, #tpu.memory_space<vmem>>, vector<1152x128xbf16>
    %cst = arith.constant dense<0.000000e+00> : vector<256x128xf32>
    %47 = tpu.matmul %45, %46, %cst {dimension_numbers = #tpu.dot_dimension_numbers<[1], [0], [0], [1], [0, 0, 1, 1], [], []>} : vector<256x1152xbf16>, vector<1152x128xbf16>, vector<256x128xf32> -> vector<256x128xf32>
    %c0_47 = arith.constant 0 : index
    %c0_48 = arith.constant 0 : index
    %48 = vector.load %arg3[%c0_47, %c0_48] : memref<1x128xf32, #tpu.memory_space<vmem>>, vector<1x128xf32>
    %49 = vector.broadcast %48 : vector<1x128xf32> to vector<256x128xf32>
    %50 = arith.addf %47, %49 : vector<256x128xf32>
    %cst_49 = arith.constant dense<0.000000e+00> : vector<128xf32>
    %51 = vector.multi_reduction <add>, %50, %cst_49 [0] : vector<256x128xf32> to vector<128xf32>
    %52 = vector.shape_cast %51 : vector<128xf32> to vector<1x128xf32>
    %53 = arith.mulf %50, %50 : vector<256x128xf32>
    %cst_50 = arith.constant dense<0.000000e+00> : vector<128xf32>
    %54 = vector.multi_reduction <add>, %53, %cst_50 [0] : vector<256x128xf32> to vector<128xf32>
    %55 = vector.shape_cast %54 : vector<128xf32> to vector<1x128xf32>
    %c0_51 = arith.constant 0 : index
    %c0_52 = arith.constant 0 : index
    %56 = vector.load %arg6[%c0_51, %c0_52] : memref<128x32xf32, #tpu.memory_space<vmem>>, vector<128x32xf32>
    %cst_53 = arith.constant dense<0.000000e+00> : vector<1x32xf32>
    %57 = tpu.matmul %52, %56, %cst_53 {dimension_numbers = #tpu.dot_dimension_numbers<[1], [0], [0], [1], [0, 0, 1, 1], [], []>} : vector<1x128xf32>, vector<128x32xf32>, vector<1x32xf32> -> vector<1x32xf32>
    %c0_54 = arith.constant 0 : index
    %c0_55 = arith.constant 0 : index
    %58 = vector.load %arg7[%c0_54, %c0_55] : memref<32x128xf32, #tpu.memory_space<vmem>>, vector<32x128xf32>
    %cst_56 = arith.constant dense<0.000000e+00> : vector<1x128xf32>
    %59 = tpu.matmul %57, %58, %cst_56 {dimension_numbers = #tpu.dot_dimension_numbers<[1], [0], [0], [1], [0, 0, 1, 1], [], []>} : vector<1x32xf32>, vector<32x128xf32>, vector<1x128xf32> -> vector<1x128xf32>
    %cst_57 = arith.constant 1.024000e+03 : f32
    %60 = vector.broadcast %cst_57 : f32 to vector<1x128xf32>
    %61 = arith.divf %59, %60 : vector<1x128xf32>
    %c0_58 = arith.constant 0 : index
    %c0_59 = arith.constant 0 : index
    %62 = vector.load %arg6[%c0_58, %c0_59] : memref<128x32xf32, #tpu.memory_space<vmem>>, vector<128x32xf32>
    %cst_60 = arith.constant dense<0.000000e+00> : vector<1x32xf32>
    %63 = tpu.matmul %55, %62, %cst_60 {dimension_numbers = #tpu.dot_dimension_numbers<[1], [0], [0], [1], [0, 0, 1, 1], [], []>} : vector<1x128xf32>, vector<128x32xf32>, vector<1x32xf32> -> vector<1x32xf32>
    %c0_61 = arith.constant 0 : index
    %c0_62 = arith.constant 0 : index
    %64 = vector.load %arg7[%c0_61, %c0_62] : memref<32x128xf32, #tpu.memory_space<vmem>>, vector<32x128xf32>
    %cst_63 = arith.constant dense<0.000000e+00> : vector<1x128xf32>
    %65 = tpu.matmul %63, %64, %cst_63 {dimension_numbers = #tpu.dot_dimension_numbers<[1], [0], [0], [1], [0, 0, 1, 1], [], []>} : vector<1x32xf32>, vector<32x128xf32>, vector<1x128xf32> -> vector<1x128xf32>
    %cst_64 = arith.constant 1.024000e+03 : f32
    %66 = vector.broadcast %cst_64 : f32 to vector<1x128xf32>
    %67 = arith.divf %65, %66 : vector<1x128xf32>
    %68 = arith.mulf %61, %61 : vector<1x128xf32>
    %69 = arith.subf %67, %68 : vector<1x128xf32>
    %cst_65 = arith.constant 9.99999974E-6 : f32
    %70 = vector.broadcast %cst_65 : f32 to vector<1x128xf32>
    %71 = arith.addf %69, %70 : vector<1x128xf32>
    %72 = math.rsqrt %71 : vector<1x128xf32>
    %73 = vector.broadcast %61 : vector<1x128xf32> to vector<256x128xf32>
    %74 = arith.subf %50, %73 : vector<256x128xf32>
    %75 = vector.broadcast %72 : vector<1x128xf32> to vector<256x128xf32>
    %76 = arith.mulf %74, %75 : vector<256x128xf32>
    %c0_66 = arith.constant 0 : index
    %c0_67 = arith.constant 0 : index
    %77 = vector.load %arg4[%c0_66, %c0_67] : memref<1x128xf32, #tpu.memory_space<vmem>>, vector<1x128xf32>
    %78 = vector.broadcast %77 : vector<1x128xf32> to vector<256x128xf32>
    %79 = arith.mulf %76, %78 : vector<256x128xf32>
    %c0_68 = arith.constant 0 : index
    %c0_69 = arith.constant 0 : index
    %80 = vector.load %arg5[%c0_68, %c0_69] : memref<1x128xf32, #tpu.memory_space<vmem>>, vector<1x128xf32>
    %81 = vector.broadcast %80 : vector<1x128xf32> to vector<256x128xf32>
    %82 = arith.addf %79, %81 : vector<256x128xf32>
    %cst_70 = arith.constant 0.000000e+00 : f32
    %83 = vector.broadcast %cst_70 : f32 to vector<256x128xf32>
    %84 = arith.maximumf %82, %83 : vector<256x128xf32>
    %85 = vector.shape_cast %84 : vector<256x128xf32> to vector<1x256x128xf32>
    %c0_71 = arith.constant 0 : index
    %c0_72 = arith.constant 0 : index
    %c0_73 = arith.constant 0 : index
    %86 = vector.load %arg8[%c0_71, %c0_72, %c0_73] : memref<1x256x128xf32, #tpu.memory_space<vmem>>, vector<1x256x128xf32>
    tpu.vector_store %arg8[%c0_71, %c0_72, %c0_73], %85 {strides = array<i32>} : memref<1x256x128xf32, #tpu.memory_space<vmem>>, vector<1x256x128xf32>,
    return
  }
  func.func @transform_0(%arg0: i32) -> (i32, i32, i32, i32) {
    %c0_i32 = arith.constant 0 : i32
    %c0_i32_0 = arith.constant 0 : i32
    %c0_i32_1 = arith.constant 0 : i32
    %c0_i32_2 = arith.constant 0 : i32
    return %arg0, %c0_i32, %c0_i32_0, %c0_i32_1 : i32, i32, i32, i32
  }
  func.func @transform_1(%arg0: i32) -> (i32, i32) {
    %c0_i32 = arith.constant 0 : i32
    %c0_i32_0 = arith.constant 0 : i32
    %c0_i32_1 = arith.constant 0 : i32
    return %c0_i32, %c0_i32_0 : i32, i32
  }
  func.func @transform_2(%arg0: i32) -> (i32, i32) {
    %c0_i32 = arith.constant 0 : i32
    %c0_i32_0 = arith.constant 0 : i32
    %c0_i32_1 = arith.constant 0 : i32
    return %c0_i32, %c0_i32_0 : i32, i32
  }
  func.func @transform_3(%arg0: i32) -> (i32, i32) {
    %c0_i32 = arith.constant 0 : i32
    %c0_i32_0 = arith.constant 0 : i32
    %c0_i32_1 = arith.constant 0 : i32
    return %c0_i32, %c0_i32_0 : i32, i32
  }
  func.func @transform_4(%arg0: i32) -> (i32, i32) {
    %c0_i32 = arith.constant 0 : i32
    %c0_i32_0 = arith.constant 0 : i32
    %c0_i32_1 = arith.constant 0 : i32
    return %c0_i32, %c0_i32_0 : i32, i32
  }
  func.func @transform_5(%arg0: i32) -> (i32, i32) {
    %c0_i32 = arith.constant 0 : i32
    %c0_i32_0 = arith.constant 0 : i32
    %c0_i32_1 = arith.constant 0 : i32
    return %c0_i32, %c0_i32_0 : i32, i32
  }
  func.func @transform_6(%arg0: i32) -> (i32, i32) {
    %c0_i32 = arith.constant 0 : i32
    %c0_i32_0 = arith.constant 0 : i32
    %c0_i32_1 = arith.constant 0 : i32
    return %c0_i32, %c0_i32_0 : i32, i32
  }
  func.func @transform_7(%arg0: i32) -> (i32, i32, i32) {
    %c0_i32 = arith.constant 0 : i32
    %c0_i32_0 = arith.constant 0 : i32
    %c0_i32_1 = arith.constant 0 : i32
    return %arg0, %c0_i32, %c0_i32_0 : i32, i32, i32
  }
}

</mosaic_0001>

<bundles_post_ra>
// kernel: upsample_gn_forward.1
= control target key start
LH: loop header
LB: loop body
LE: loop exit
PB: predicated region body
PF: predicated region fallthrough
CT: control target
= control target key end

     0   :  { %12 = vsyncpa [#allocation4], 0  ;;  %s5675_s0 = inlined_call_operand.vmem [shape: f32[2,18,18,128], index: 0, kind: input, shape index: {}]   ;;  %s5676_s1 = inlined_call_operand.vmem [shape: bf16[1152,128], index: 1, kind: input, shape index: {}]   ;;  %s5677_s2 = inlined_call_operand.vmem [shape: f32[1,128], index: 2, kind: input, shape index: {}]   ;;  %s5678_s3 = inlined_call_operand.vmem [shape: f32[1,128], index: 3, kind: input, shape index: {}]   ;;  %s5679_s4 = inlined_call_operand.vmem [shape: f32[1,128], index: 4, kind: input, shape index: {}]   ;;  %s5680_s5 = inlined_call_operand.vmem [shape: f32[128,32], index: 5, kind: input, shape index: {}]   ;;  %s5681_s6 = inlined_call_operand.vmem [shape: f32[32,128], index: 6, kind: input, shape index: {}]   ;;  %s5682_s7 = inlined_call_operand.hbm [shape: f32[2,256,128], index: 7, kind: output, shape index: {}]  }
   0x1   :  { %14 = vsyncpa [#allocation4 + $0x1], 0  ;;  %s4324_s24 = smov 0   ;;  %s4326_s25 = smov 0  }
   0x2   :  { %s4328_s26 = smov 0   ;;  %s4330_s27 = smov 0  }
   0x3 LB: > { %s4345_s28 = sadd.s32 4294967295, %s4276_s27   ;;  %s3098_s29 = sadd.s32 4294967294, %s4276_s27   ;;  %s4276_s27 = sphi %s4330_s27, %s5688_s27   ;;  %s4272_s26 = sphi %s4328_s26, %s5687_s26   ;;  %s4268_s25 = sphi %s4326_s25, %s5686_s25   ;;  %s4264_s24 = sphi %s4324_s24, %s5685_s24  }
   0x4   : > { %s4349_s30 = sadd.s32 1, %s4276_s27   ;;  %s179_s8 = sadd.s32 1, %s4272_s26 }
   0x5   : > { %s176_s9 = ssub.s32 %s4276_s27, %s4349_s30  ;;  %p189_p0 = scmp.ne.s32.totalorder %s4272_s26, %s4268_s25 }
   0x6   : > { %p177_p1 = scmp.eq.s32.totalorder %s176_s9, 0  ;;  %p190_p2 = scmp.eq.s32.totalorder %s4345_s28, 1 }
   0x7   : > { %p195_p3 = scmp.ne.s32.totalorder %s4268_s25, %s4264_s24  ;;  %p196_p4 = scmp.eq.s32.totalorder %s3098_s29, 1 }
   0x8   : > { %s4360_s10 = scalar_select %p177_p1, %s4272_s26, %s179_s8  }
   0x9   : > { %p4362_p5 = por %p190_p2, %p189_p0  ;;  %p4366_p6 = por %p196_p4, %p195_p3 }
   0xa   : > { %p3101_p7 = scmp.ge.s32.totalorder %s4276_s27, 1  ;;  %p240_p8 = scmp.lt.s32.totalorder %s4276_s27, 3 }
   0xc   : > { %p241_p9 = pnand %p3101_p7, %p240_p8 }
   0xd   : > { %v4140_v0 = vld [vmem:[%s5676_s1 + $0x40] sm:$0xff] (!%p241_p9)   ;;  %v4144_v4 = vld [vmem:[%s5676_s1 + $0x48] sm:$0xff] (!%p241_p9)   ;;  %v4148_v8 = vld [vmem:[%s5676_s1 + $0x50] sm:$0xff] (!%p241_p9)   ;;  %p272_p10 = scmp.lt.s32.totalorder (!%p241_p9), %s4345_s28, 1  ;;  %vm4279_vm0 = vmmov (!%p241_p9), 0   ;;  %vm2584_vm1 = vcmask (!%p241_p9), 261120  }
   0xe   : > { %244 = sbr.rel (%p241_p9) target bundleno = 1336 (0x538), region = 48  ;;  %v4141_v1 = vld [vmem:[%s5676_s1] sm:$0xff] (!%p241_p9)   ;;  %3379 = vmatprep.subr.bf16.mxu0 (!%p241_p9), %v4140_v0  ;;  %v4145_v5 = vld [vmem:[%s5676_s1 + $0x8] sm:$0xff] (!%p241_p9)   ;;  %v4149_v9 = vld [vmem:[%s5676_s1 + $0x10] sm:$0xff] (!%p241_p9)   ;;  %s269_s18 = sand.u32 (!%p241_p9), 1, %s4268_s25  }
   0xf   : > { %v4142_v2 = vld [vmem:[%s5676_s1 + $0xc0] sm:$0xff] (!%p241_p9)   ;;  %3380 = vmatpush3.bf16.msra.mxu0 (!%p241_p9), %v4141_v1  ;;  %v4146_v6 = vld [vmem:[%s5676_s1 + $0xc8] sm:$0xff] (!%p241_p9)   ;;  %v4150_v10 = vld [vmem:[%s5676_s1 + $0xd0] sm:$0xff] (!%p241_p9)   ;;  %s3102_s20 = sshll.u32 (!%p241_p9), %s269_s18, 8  ;;  %s3378_s23 = sshll.u32 (!%p241_p9), %s4345_s28, 12 }
  0x10   : > { %v4143_v3 = vld [vmem:[%s5676_s1 + $0x80] sm:$0xff] (!%p241_p9)   ;;  %3491 = vmatprep.subr.bf16.mxu1 (!%p241_p9), %v4142_v2  ;;  %3381 = vmatprep.subr.bf16.mxu0 (!%p241_p9), %v4144_v4  ;;  %v4147_v7 = vld [vmem:[%s5676_s1 + $0x88] sm:$0xff] (!%p241_p9)   ;;  %v4151_v11 = vld [vmem:[%s5676_s1 + $0x90] sm:$0xff] (!%p241_p9)   ;;  %s5573_s21 = scalar_lea.vmem (!%p241_p9), [#allocation3], %s3102_s20  ;;  %s5634_s8 = scalar_lea.sflag (!%p241_p9), [#allocation4], %s269_s18 }
  0x11   : > { %3492 = vmatpush3.bf16.msra.mxu1 (!%p241_p9), %v4143_v3  ;;  %v4152_v12 = vld [vmem:[%s5676_s1 + $0x58] sm:$0xff] (!%p241_p9)   ;;  %v4156_v16 = vld [vmem:[%s5676_s1 + $0x60] sm:$0xff] (!%p241_p9)   ;;  %v4160_v20 = vld [vmem:[%s5676_s1 + $0x68] sm:$0xff] (!%p241_p9)   ;;  %s4281_s14 = smov (!%p241_p9), [#allocation3]  }
  0x12   : > { %3493 = vmatprep.subr.bf16.mxu1 (!%p241_p9), %v4146_v6  ;;  %v4153_v13 = vld [vmem:[%s5676_s1 + $0x18] sm:$0xff] (!%p241_p9)   ;;  %v4157_v17 = vld [vmem:[%s5676_s1 + $0x20] sm:$0xff] (!%p241_p9)   ;;  %v4161_v21 = vld [vmem:[%s5676_s1 + $0x28] sm:$0xff] (!%p241_p9)   ;;  %s4218_s15 = sshll.u32 (!%p241_p9), %s4281_s14, 4  ;;  %s4219_s15 = int_to_ptr.vmem [resolvable:$false] %s4218_s15 }
  0x13   : > { %3382 = vmatpush3.bf16.msra.mxu0 (!%p241_p9), %v4145_v5  ;;  %v4154_v14 = vld [vmem:[%s5676_s1 + $0xd8] sm:$0xff] (!%p241_p9)   ;;  %v4158_v18 = vld [vmem:[%s5676_s1 + $0xe0] sm:$0xff] (!%p241_p9)   ;;  %v4162_v22 = vld [vmem:[%s5676_s1 + $0xe8] sm:$0xff] (!%p241_p9)   ;;  %s4220_s16 = scalar_lea.vmem (!%p241_p9), %s4219_s15, 8192 }
  0x14   : > { %3383 = vmatprep.subr.bf16.mxu0 (!%p241_p9), %v4148_v8  ;;  %v4155_v15 = vld [vmem:[%s5676_s1 + $0x98] sm:$0xff] (!%p241_p9)   ;;  %v4159_v19 = vld [vmem:[%s5676_s1 + $0xa0] sm:$0xff] (!%p241_p9)   ;;  %v4163_v23 = vld [vmem:[%s5676_s1 + $0xa8] sm:$0xff] (!%p241_p9)  }
  0x15   : > { %3494 = vmatpush3.bf16.msra.mxu1 %v4147_v7  ;;  %s273_s13 = scalar_select %p272_p10, %s4345_s28, 1  ;;  %v4164_v24 = vld [vmem:[%s5676_s1 + $0x70] sm:$0xff]   ;;  %v4168_v28 = vld [vmem:[%s5676_s1 + $0x78] sm:$0xff]   ;;  %v4172_v38 = vld [vmem:[%s5676_s1 + $0x140] sm:$0xff]  }
  0x16   : > { %3495 = vmatprep.subr.bf16.mxu1 %v4150_v10  ;;  %v4165_v25 = vld [vmem:[%s5676_s1 + $0x30] sm:$0xff]   ;;  %v4169_v29 = vld [vmem:[%s5676_s1 + $0x38] sm:$0xff]   ;;  %v4173_v42 = vld [vmem:[%s5676_s1 + $0x100] sm:$0xff]  }
  0x17   : > { %3384 = vmatpush3.bf16.msra.mxu0 %v4149_v9  ;;  %s4095_s22 = smul.u32 432, %s273_s13  ;;  %v4166_v26 = vld [vmem:[%s5676_s1 + $0xf0] sm:$0xff]   ;;  %v4170_v30 = vld [vmem:[%s5676_s1 + $0xf8] sm:$0xff]   ;;  %v4174_v56 = vld [vmem:[%s5676_s1 + $0x148] sm:$0xff]  }
  0x18   : > { %3385 = vmatprep.subr.bf16.mxu0 %v4152_v12  ;;  %v4167_v27 = vld [vmem:[%s5676_s1 + $0xb0] sm:$0xff]   ;;  %v4171_v34 = vld [vmem:[%s5676_s1 + $0xb8] sm:$0xff]   ;;  %v4175_v60 = vld [vmem:[%s5676_s1 + $0x108] sm:$0xff]  }
  0x19   : > { %3496 = vmatpush3.bf16.msra.mxu1 %v4151_v11  ;;  %s4464_s19 = scalar_lea.vmem %s5675_s0, %s4095_s22  ;;  %v4176_v1 = vld [vmem:[%s5676_s1 + $0x150] sm:$0xff]   ;;  %v4178_v10 = vld [vmem:[%s5676_s1 + $0x158] sm:$0xff]   ;;  %s5612_s22 = scalar_lea.hbm %s5682_s7, %s3378_s23 }
  0x1a   : > { %3497 = vmatprep.subr.bf16.mxu1 %v4154_v14  ;;  %v342_v31 = vld [vmem:[%s4464_s19 + $0x1] sm:$0xff]  ;;  %v343_v32 = vld [vmem:[%s4464_s19 + $0x9] sm:$0xff]  ;;  %v3104_v39 = vld [vmem:[%s4464_s19 + $0x18] sm:$0xff] }
  0x1b   : > { %3386 = vmatpush3.bf16.msra.mxu0 %v4153_v13  ;;  %v374_v33 = vpack.c.bf16 %v343_v32, %v342_v31  ;;  %v278_v35 = vld [vmem:[%s4464_s19] sm:$0xff]  ;;  %v279_v36 = vld [vmem:[%s4464_s19 + $0x8] sm:$0xff]  ;;  %v3106_v48 = vld [vmem:[%s4464_s19 + $0x30] sm:$0xff] }
  0x1c   : > { %3387 = vmatprep.subr.bf16.mxu0 %v4156_v16  ;;  %v310_v37 = vpack.c.bf16 %v279_v36, %v278_v35  ;;  %v3105_v40 = vld [vmem:[%s4464_s19 + $0x20] sm:$0xff]  ;;  %v407_v44 = vld [vmem:[%s4464_s19 + $0xa] sm:$0xff]  ;;  %v3107_v49 = vld [vmem:[%s4464_s19 + $0x38] sm:$0xff] }
  0x1d   : > { %3498 = vmatpush3.bf16.msra.mxu1 %v4155_v15  ;;  %1615 = vmatprep.mubr.bf16.mxu0 %v374_v33  ;;  %v503_v41 = vpack.c.bf16 %v3105_v40, %v3104_v39  ;;  %v406_v43 = vld [vmem:[%s4464_s19 + $0x2] sm:$0xff]  ;;  %v344_v45 = vld [vmem:[%s4464_s19 + $0x19] sm:$0xff]  ;;  %v4495_v51 = vpack.c.bf16 %v3107_v49, %v3106_v48  ;;  %v346_v54 = vld [vmem:[%s4464_s19 + $0x31] sm:$0xff] }
  0x1e   : > { %3499 = vmatprep.subr.bf16.mxu1 %v4158_v18  ;;  %v438_v46 = vpack.c.bf16 %v407_v44, %v406_v43  ;;  %v345_v47 = vld [vmem:[%s4464_s19 + $0x21] sm:$0xff]  ;;  %v347_v55 = vld [vmem:[%s4464_s19 + $0x39] sm:$0xff]  ;;  %v3109_v58 = vld [vmem:[%s4464_s19 + $0x50] sm:$0xff] }
  0x1f   : > { %3388 = vmatpush3.bf16.msra.mxu0 %v4157_v17  ;;  %1776 = vmatprep.mubr.bf16.mxu1 %v503_v41  ;;  %v4493_v50 = vpack.c.bf16 %v345_v47, %v344_v45  ;;  %v408_v52 = vld [vmem:[%s4464_s19 + $0x1a] sm:$0xff]  ;;  %v409_v53 = vld [vmem:[%s4464_s19 + $0x22] sm:$0xff]  ;;  %v4508_v59 = vpack.c.bf16 %v347_v55, %v346_v54  ;;  %v349_v0 = vld [vmem:[%s4464_s19 + $0x51] sm:$0xff] }
  0x20   : > { %3389 = vmatprep.subr.bf16.mxu0 %v4160_v20  ;;  %v3108_v57 = vld [vmem:[%s4464_s19 + $0x48] sm:$0xff]  ;;  %v4513_v61 = vpack.c.bf16 %v409_v53, %v408_v52  ;;  %v4177_v2 = vld [vmem:[%s5676_s1 + $0x110] sm:$0xff]   ;;  %v411_v4 = vld [vmem:[%s4464_s19 + $0x3a] sm:$0xff] }
  0x21   : > { %3500 = vmatpush3.bf16.msra.mxu1 %v4159_v19  ;;  %v4515_v62 = vpack.c.bf16 %v3109_v58, %v3108_v57  ;;  %v348_v63 = vld [vmem:[%s4464_s19 + $0x49] sm:$0xff]  ;;  %v410_v3 = vld [vmem:[%s4464_s19 + $0x32] sm:$0xff]  ;;  %v3110_v6 = vld [vmem:[%s4464_s19 + $0x60] sm:$0xff] }
  0x22   : > { %3501 = vmatprep.subr.bf16.mxu1 %v4162_v22  ;;  %v4530_v5 = vpack.c.bf16 %v349_v0, %v348_v63  ;;  %v3111_v7 = vld [vmem:[%s4464_s19 + $0x68] sm:$0xff]  ;;  %v4534_v8 = vpack.c.bf16 %v411_v4, %v410_v3  ;;  %v4179_v11 = vld [vmem:[%s5676_s1 + $0x118] sm:$0xff]   ;;  %v3113_v18 = vld [vmem:[%s4464_s19 + $0x80] sm:$0xff] }
  0x23   : > { %3390 = vmatpush3.bf16.msra.mxu0 %v4161_v21  ;;  %v4537_v9 = vpack.c.bf16 %v3111_v7, %v3110_v6  ;;  %v350_v12 = vld [vmem:[%s4464_s19 + $0x61] sm:$0xff]  ;;  %v351_v13 = vld [vmem:[%s4464_s19 + $0x69] sm:$0xff]  ;;  %v413_v15 = vld [vmem:[%s4464_s19 + $0x52] sm:$0xff] }
  0x24   : > { %3391 = vmatprep.subr.bf16.mxu0 %v4164_v24  ;;  %v412_v14 = vld [vmem:[%s4464_s19 + $0x4a] sm:$0xff]  ;;  %v3112_v16 = vld [vmem:[%s4464_s19 + $0x78] sm:$0xff]  ;;  %v4553_v17 = vpack.c.bf16 %v351_v13, %v350_v12  ;;  %v4180_v19 = vld [vmem:[%s5676_s1 + $0x160] sm:$0xff]  }
  0x25   : > { %3502 = vmatpush3.bf16.msra.mxu1 %v4163_v23  ;;  %v4559_v20 = vpack.c.bf16 %v413_v15, %v412_v14  ;;  %v4181_v21 = vld [vmem:[%s5676_s1 + $0x1c0] sm:$0xff]   ;;  %v4565_v22 = vpack.c.bf16 %v3113_v18, %v3112_v16  ;;  %v3115_v31 = vld [vmem:[%s4464_s19 + $0x98] sm:$0xff]  ;;  %v4184_v32 = vld [vmem:[%s5676_s1 + $0x168] sm:$0xff]  }
  0x26   : > { %3503 = vmatprep.subr.bf16.mxu1 %v4166_v26  ;;  %v4182_v23 = vld [vmem:[%s5676_s1 + $0x120] sm:$0xff]   ;;  %v4186_v36 = vld [vmem:[%s5676_s1 + $0x128] sm:$0xff]   ;;  %v3117_v44 = vld [vmem:[%s4464_s19 + $0xb0] sm:$0xff] }
  0x27   : > { %3392 = vmatpush3.bf16.msra.mxu0 %v4165_v25  ;;  %v4183_v24 = vld [vmem:[%s5676_s1 + $0x180] sm:$0xff]   ;;  %v4188_v45 = vld [vmem:[%s5676_s1 + $0x170] sm:$0xff]   ;;  %v4192_v63 = vld [vmem:[%s5676_s1 + $0x1d8] sm:$0xff]  }
  0x28   : > { %3393 = vmatprep.subr.bf16.mxu0 %v4168_v28  ;;  %v352_v25 = vld [vmem:[%s4464_s19 + $0x79] sm:$0xff]  ;;  %v353_v26 = vld [vmem:[%s4464_s19 + $0x81] sm:$0xff]  ;;  %v415_v28 = vld [vmem:[%s4464_s19 + $0x6a] sm:$0xff] }
  0x29   : > { %3504 = vmatpush3.bf16.msra.mxu1 %v4167_v27  ;;  %v414_v27 = vld [vmem:[%s4464_s19 + $0x62] sm:$0xff]  ;;  %v355_v39 = vld [vmem:[%s4464_s19 + $0x99] sm:$0xff]  ;;  %v4189_v47 = vld [vmem:[%s5676_s1 + $0x1d0] sm:$0xff]  }
  0x2a   : > { %3505 = vmatprep.subr.bf16.mxu1 %v4170_v30  ;;  %v4581_v30 = vpack.c.bf16 %v353_v26, %v352_v25  ;;  %v4587_v33 = vpack.c.bf16 %v415_v28, %v414_v27  ;;  %v416_v40 = vld [vmem:[%s4464_s19 + $0x7a] sm:$0xff]  ;;  %v4190_v49 = vld [vmem:[%s5676_s1 + $0x130] sm:$0xff]   ;;  %v4198_v18 = vld [vmem:[%s5676_s1 + $0x1e8] sm:$0xff]  }
  0x2b   : > { %3394 = vmatpush3.bf16.msra.mxu0 %v4169_v29  ;;  %v3114_v29 = vld [vmem:[%s4464_s19 + $0x90] sm:$0xff]  ;;  %v3118_v57 = vld [vmem:[%s4464_s19 + $0xc0] sm:$0xff]  ;;  %v4194_v3 = vld [vmem:[%s5676_s1 + $0x178] sm:$0xff]  }
  0x2c   : > { %3603 = vmatprep.subr.bf16.mxu0 %v4172_v38  ;;  %v4593_v35 = vpack.c.bf16 %v3115_v31, %v3114_v29  ;;  %v354_v38 = vld [vmem:[%s4464_s19 + $0x91] sm:$0xff]  ;;  %v356_v53 = vld [vmem:[%s4464_s19 + $0xa9] sm:$0xff]  ;;  %v4196_v13 = vld [vmem:[%s5676_s1 + $0x1e0] sm:$0xff]  }
  0x2d   : > { %3506 = vmatpush3.bf16.msra.mxu1 %v4171_v34  ;;  %v4185_v34 = vld [vmem:[%s5676_s1 + $0x1c8] sm:$0xff]   ;;  %v4609_v43 = vpack.c.bf16 %v355_v39, %v354_v38  ;;  %v4191_v52 = vld [vmem:[%s5676_s1 + $0x190] sm:$0xff]   ;;  %v4195_v4 = vld [vmem:[%s5676_s1 + $0x138] sm:$0xff]  }
  0x2e   : > { %1616 = vmatmul.mubr.bf16.vlgmr.msra.gmra.mrb[0].mxu0 %v310_v37  ;;  %3715 = vmatprep.subr.bf16.mxu1 %v4181_v21  ;;  %v4187_v37 = vld [vmem:[%s5676_s1 + $0x188] sm:$0xff]   ;;  %v357_v54 = vld [vmem:[%s4464_s19 + $0xb1] sm:$0xff]  ;;  %v4197_v14 = vld [vmem:[%s5676_s1 + $0x1a0] sm:$0xff]  }
  0x2f   : > { %3604 = vmatpush3.bf16.msra.mxu0 %v4173_v42  ;;  %1623 = vmatprep.mubr.bf16.mxu0 %v4493_v50  ;;  %v3116_v42 = vld [vmem:[%s4464_s19 + $0xa8] sm:$0xff]  ;;  %v418_v55 = vld [vmem:[%s4464_s19 + $0x92] sm:$0xff]  ;;  %v4637_v58 = vpack.c.bf16 %v357_v54, %v356_v53  ;;  %v3121_v16 = vld [vmem:[%s4464_s19 + $0xe0] sm:$0xff] }
  0x30   : > { %1777 = vmatmul.mubr.bf16.vlgmr.msra.gmra.mrb[0].mxu1 %v438_v46  ;;  %3605 = vmatprep.subr.bf16.mxu0 %v4174_v56  ;;  %v4621_v48 = vpack.c.bf16 %v3117_v44, %v3116_v42  ;;  %v419_v56 = vld [vmem:[%s4464_s19 + $0x9a] sm:$0xff]  ;;  %v420_v6 = vld [vmem:[%s4464_s19 + $0xaa] sm:$0xff]  ;;  %v421_v7 = vld [vmem:[%s4464_s19 + $0xb2] sm:$0xff] }
  0x31   : > { %1784 = vmatprep.mubr.bf16.mxu1 %v4495_v51  ;;  %3716 = vmatpush3.bf16.msra.mxu1 %v4183_v24  ;;  %v4643_v0 = vpack.c.bf16 %v419_v56, %v418_v55  ;;  %v3120_v12 = vld [vmem:[%s4464_s19 + $0xd8] sm:$0xff]  ;;  %v4199_v21 = vld [vmem:[%s5676_s1 + $0x1a8] sm:$0xff]   ;;  %v4200_v26 = vld [vmem:[%s5676_s1 + $0x1f0] sm:$0xff]  }
  0x32   : > { %3717 = vmatprep.subr.bf16.mxu1 %v4185_v34  ;;  %v360_v24 = vld [vmem:[%s4464_s19 + $0xd9] sm:$0xff]  ;;  %v361_v25 = vld [vmem:[%s4464_s19 + $0xe1] sm:$0xff]  ;;  %v423_v28 = vld [vmem:[%s4464_s19 + $0xca] sm:$0xff] }
  0x33   : > { %3606 = vmatpush3.bf16.msra.mxu0 %v4175_v60  ;;  %v3119_v60 = vld [vmem:[%s4464_s19 + $0xc8] sm:$0xff]  ;;  %v4201_v29 = vld [vmem:[%s5676_s1 + $0x1b0] sm:$0xff]   ;;  %v3123_v34 = vld [vmem:[%s4464_s19 + $0xf8] sm:$0xff] }
  0x34   : > { %3607 = vmatprep.subr.bf16.mxu0 %v4176_v1  ;;  %v4193_v1 = vld [vmem:[%s5676_s1 + $0x198] sm:$0xff]   ;;  %v422_v27 = vld [vmem:[%s4464_s19 + $0xc2] sm:$0xff]  ;;  %v3122_v31 = vld [vmem:[%s4464_s19 + $0xf0] sm:$0xff] }
  0x35   : > { %3718 = vmatpush3.bf16.msra.mxu1 %v4187_v37  ;;  %v4708_v37 = vld [vmem:[%s5676_s1 + $0x200] sm:$0xff]   ;;  %v4203_v38 = vld [vmem:[%s5676_s1 + $0x1b8] sm:$0xff]   ;;  %v4713_v39 = vpack.c.bf16 %v423_v28, %v422_v27  ;;  %v364_v55 = vld [vmem:[%s4464_s19 + $0x109] sm:$0xff] }
  0x36   : > { %1624 = vmatmul.mubr.bf16.gmra.mrb[4].mxu0 %v503_v41  ;;  %v417_v41 = vld [vmem:[%s4464_s19 + $0x82] sm:$0xff]  ;;  %3719 = vmatprep.subr.bf16.mxu1 %v4189_v47  ;;  %v363_v42 = vld [vmem:[%s4464_s19 + $0xf9] sm:$0xff]  ;;  %v365_v56 = vld [vmem:[%s4464_s19 + $0x111] sm:$0xff] }
  0x37   : > { %1631 = vmatprep.mubr.bf16.mxu0 %v4508_v59  ;;  %3608 = vmatpush3.bf16.msra.mxu0 %v4177_v2  ;;  %v4615_v46 = vpack.c.bf16 %v417_v41, %v416_v40  ;;  %v4649_v2 = vpack.c.bf16 %v3119_v60, %v3118_v57  ;;  %v4717_v40 = vpack.c.bf16 %v3123_v34, %v3122_v31  ;;  %v362_v41 = vld [vmem:[%s4464_s19 + $0xf1] sm:$0xff]  ;;  %v424_v44 = vld [vmem:[%s4464_s19 + $0xda] sm:$0xff] }
  0x38   : > { %1785 = vmatmul.mubr.bf16.gmra.mrb[4].mxu1 %v4513_v61  ;;  %3609 = vmatprep.subr.bf16.mxu0 %v4178_v10  ;;  %v358_v10 = vld [vmem:[%s4464_s19 + $0xc1] sm:$0xff]  ;;  %v4726_v47 = vpack.c.bf16 %v363_v42, %v362_v41  ;;  %v426_v57 = vld [vmem:[%s4464_s19 + $0xf2] sm:$0xff]  ;;  %v431_v27 = vld [vmem:[%s4464_s19 + $0x12a] sm:$0xff] }
  0x39   : > { %1792 = vmatprep.mubr.bf16.mxu1 %v4515_v62  ;;  %3720 = vmatpush3.bf16.msra.mxu1 %v4191_v52  ;;  %v3125_v52 = vld [vmem:[%s4464_s19 + $0x110] sm:$0xff]  ;;  %v427_v60 = vld [vmem:[%s4464_s19 + $0xfa] sm:$0xff] }
  0x3a   : > { %3721 = vmatprep.subr.bf16.mxu1 %v4192_v63  ;;  %v4742_v63 = vpack.c.bf16 %v365_v56, %v364_v55  ;;  %v3131_v31 = vld [vmem:[%s4464_s19 + $0x158] sm:$0xff] }
  0x3b   : > { %3610 = vmatpush3.bf16.msra.mxu0 %v4179_v11  ;;  %v359_v11 = vld [vmem:[%s4464_s19 + $0xc9] sm:$0xff]  ;;  %v371_v41 = vld [vmem:[%s4464_s19 + $0x159] sm:$0xff] }
  0x3c   : > { %3611 = vmatprep.subr.bf16.mxu0 %v4180_v19  ;;  %v4671_v15 = vpack.c.bf16 %v359_v11, %v358_v10  ;;  %v4677_v19 = vpack.c.bf16 %v421_v7, %v420_v6  ;;  %v366_v7 = vld [vmem:[%s4464_s19 + $0x121] sm:$0xff]  ;;  %v367_v10 = vld [vmem:[%s4464_s19 + $0x129] sm:$0xff] }
  0x3d   : > { %3722 = vmatpush3.bf16.msra.mxu1 %v4193_v1  ;;  %v3126_v1 = vld [vmem:[%s4464_s19 + $0x120] sm:$0xff]  ;;  %v428_v11 = vld [vmem:[%s4464_s19 + $0x10a] sm:$0xff] }
  0x3e   : > { %1632 = vmatmul.mubr.bf16.gmra.mrb[8].mxu0 %v4495_v51  ;;  %3723 = vmatprep.subr.bf16.mxu1 %v4196_v13  ;;  %v4758_v13 = vpack.c.bf16 %v367_v10, %v366_v7  ;;  %v432_v42 = vld [vmem:[%s4464_s19 + $0x13a] sm:$0xff] }
  0x3f   : > { %1639 = vmatprep.mubr.bf16.mxu0 %v4530_v5  ;;  %3612 = vmatpush3.bf16.msra.mxu0 %v4182_v23  ;;  %v4683_v23 = vpack.c.bf16 %v3121_v16, %v3120_v12  ;;  %v429_v12 = vld [vmem:[%s4464_s19 + $0x112] sm:$0xff]  ;;  %v3129_v16 = vld [vmem:[%s4464_s19 + $0x140] sm:$0xff] }
  0x40   : > { %1793 = vmatmul.mubr.bf16.gmra.mrb[8].mxu1 %v4534_v8  ;;  %3613 = vmatprep.subr.bf16.mxu0 %v4184_v32  ;;  %v4202_v32 = vld [vmem:[%s5676_s1 + $0x1f8] sm:$0xff]   ;;  %v3134_v10 = vld [vmem:[%s4464_s19 + $0x180] sm:$0xff] }
  0x41   : > { %1800 = vmatprep.mubr.bf16.mxu1 %v4537_v9  ;;  %3724 = vmatpush3.bf16.msra.mxu1 %v4197_v14  ;;  %v3128_v14 = vld [vmem:[%s4464_s19 + $0x138] sm:$0xff] }
  0x42   : > { %3725 = vmatprep.subr.bf16.mxu1 %v4198_v18  ;;  %v4762_v18 = vpack.c.bf16 %v429_v12, %v428_v11  ;;  %v3135_v11 = vld [vmem:[%s4464_s19 + $0x188] sm:$0xff] }
  0x43   : > { %3614 = vmatpush3.bf16.msra.mxu0 %v4186_v36  ;;  %v4703_v36 = vpack.c.bf16 %v361_v25, %v360_v24  ;;  %v368_v24 = vld [vmem:[%s4464_s19 + $0x139] sm:$0xff]  ;;  %v369_v25 = vld [vmem:[%s4464_s19 + $0x141] sm:$0xff] }
  0x44   : > { %3615 = vmatprep.subr.bf16.mxu0 %v4188_v45  ;;  %v425_v45 = vld [vmem:[%s4464_s19 + $0xe2] sm:$0xff]  ;;  %v4774_v28 = vpack.c.bf16 %v369_v25, %v368_v24  ;;  %v437_v24 = vld [vmem:[%s4464_s19 + $0x172] sm:$0xff] }
  0x45   : > { %3726 = vmatpush3.bf16.msra.mxu1 %v4199_v21  ;;  %v4730_v53 = vpack.c.bf16 %v425_v45, %v424_v44  ;;  %v4765_v21 = vpack.c.bf16 %v3129_v16, %v3128_v14  ;;  %v433_v44 = vld [vmem:[%s4464_s19 + $0x142] sm:$0xff]  ;;  %v4813_v14 = vpack.c.bf16 %v3135_v11, %v3134_v10  ;;  %v436_v16 = vld [vmem:[%s4464_s19 + $0x16a] sm:$0xff] }
  0x46   : > { %1640 = vmatmul.mubr.bf16.gmra.mrb[12].mxu0 %v4515_v62  ;;  %3727 = vmatprep.subr.bf16.mxu1 %v4200_v26  ;;  %v430_v26 = vld [vmem:[%s4464_s19 + $0x122] sm:$0xff]  ;;  %v4794_v55 = vpack.c.bf16 %v433_v44, %v432_v42  ;;  %v4820_v25 = vpack.c.bf16 %v437_v24, %v436_v16 }
  0x47   : > { %1647 = vmatprep.mubr.bf16.mxu0 %v4553_v17  ;;  %3616 = vmatpush3.bf16.msra.mxu0 %v4190_v49  ;;  %v3124_v49 = vld [vmem:[%s4464_s19 + $0x108] sm:$0xff] }
  0x48   : > { %1801 = vmatmul.mubr.bf16.gmra.mrb[12].mxu1 %v4559_v20  ;;  %3617 = vmatprep.subr.bf16.mxu0 %v4194_v3  ;;  %v4733_v54 = vpack.c.bf16 %v3125_v52, %v3124_v49  ;;  %v3127_v3 = vld [vmem:[%s4464_s19 + $0x128] sm:$0xff]  ;;  %v3133_v52 = vld [vmem:[%s4464_s19 + $0x170] sm:$0xff] }
  0x49   : > { %1808 = vmatprep.mubr.bf16.mxu1 %v4565_v22  ;;  %3728 = vmatpush3.bf16.msra.mxu1 %v4201_v29  ;;  %v4749_v6 = vpack.c.bf16 %v3127_v3, %v3126_v1  ;;  %v3130_v29 = vld [vmem:[%s4464_s19 + $0x150] sm:$0xff]  ;;  %v3132_v49 = vld [vmem:[%s4464_s19 + $0x168] sm:$0xff]  ;;  %v435_v3 = vld [vmem:[%s4464_s19 + $0x15a] sm:$0xff] }
  0x4a   : > { %3729 = vmatprep.subr.bf16.mxu1 %v4202_v32  ;;  %v4778_v32 = vpack.c.bf16 %v431_v27, %v430_v26  ;;  %v4781_v34 = vpack.c.bf16 %v3131_v31, %v3130_v29  ;;  %v4797_v56 = vpack.c.bf16 %v3133_v52, %v3132_v49  ;;  %v434_v1 = vld [vmem:[%s4464_s19 + $0x152] sm:$0xff]  ;;  %v4205_v26 = vld [vmem:[%s5676_s1 + $0x208] sm:$0xff]  }
  0x4b   : > { %3618 = vmatpush3.bf16.msra.mxu0 %v4195_v4  ;;  %v4746_v4 = vpack.c.bf16 %v427_v60, %v426_v57  ;;  %v372_v57 = vld [vmem:[%s4464_s19 + $0x169] sm:$0xff]  ;;  %v373_v60 = vld [vmem:[%s4464_s19 + $0x171] sm:$0xff]  ;;  %v4810_v12 = vpack.c.bf16 %v435_v3, %v434_v1  ;;  %v3260_v44 = vld [vmem:[%s4464_s19 + $0x181] sm:$0xff] }
  0x4c   : > { %3895 = vmatprep.subr.bf16.mxu0 %v4708_v37  ;;  %v4806_v7 = vpack.c.bf16 %v373_v60, %v372_v57  ;;  %v4206_v27 = vld [vmem:[%s5676_s1 + $0x210] sm:$0xff]   ;;  %v3198_v24 = vld [vmem:[%s4464_s19 + $0x182] sm:$0xff] }
  0x4d   : > { %3730 = vmatpush3.bf16.msra.mxu1 %v4203_v38  ;;  %v370_v38 = vld [vmem:[%s4464_s19 + $0x151] sm:$0xff] }
  0x4e   : > { %1648 = vmatmul.mubr.bf16.gmra.mrb[16].mxu0 %v4537_v9  ;;  %v4790_v45 = vpack.c.bf16 %v371_v41, %v370_v38 }
  0x4f   : > { %1655 = vmatprep.mubr.bf16.mxu0 %v4581_v30 }
  0x50   : > { %1809 = vmatmul.mubr.bf16.gmra.mrb[16].mxu1 %v4587_v33 }
  0x51   : > { %1816 = vmatprep.mubr.bf16.mxu1 %v4593_v35 }
  0x56   : > { %1656 = vmatmul.mubr.bf16.gmra.mrb[20].mxu0 %v4565_v22 }
  0x57   : > { %1663 = vmatprep.mubr.bf16.mxu0 %v4609_v43 }
  0x58   : > { %1817 = vmatmul.mubr.bf16.gmra.mrb[20].mxu1 %v4615_v46 }
  0x59   : > { %1824 = vmatprep.mubr.bf16.mxu1 %v4621_v48 }
  0x5e   : > { %1664 = vmatmul.mubr.bf16.gmra.mrb[24].mxu0 %v4593_v35 }
  0x5f   : > { %1671 = vmatprep.mubr.bf16.mxu0 %v4637_v58 }
  0x60   : > { %1825 = vmatmul.mubr.bf16.gmra.mrb[24].mxu1 %v4643_v0 }
  0x61   : > { %1832 = vmatprep.mubr.bf16.mxu1 %v4649_v2 }
  0x66   : > { %1672 = vmatmul.mubr.bf16.gmra.mrb[28].mxu0 %v4621_v48 }
  0x67   : > { %1679 = vmatprep.mubr.bf16.mxu0 %v4671_v15 }
  0x68   : > { %1833 = vmatmul.mubr.bf16.gmra.mrb[28].mxu1 %v4677_v19 }
  0x69   : > { %1840 = vmatprep.mubr.bf16.mxu1 %v4683_v23 }
  0x6e   : > { %1680 = vmatmul.mubr.bf16.gmra.mrb[32].mxu0 %v4649_v2 }
  0x6f   : > { %1687 = vmatprep.mubr.bf16.mxu0 %v4703_v36 }
  0x70   : > { %1841 = vmatmul.mubr.bf16.gmra.mrb[32].mxu1 %v4713_v39 }
  0x71   : > { %1848 = vmatprep.mubr.bf16.mxu1 %v4717_v40 }
  0x76   : > { %1688 = vmatmul.mubr.bf16.gmra.mrb[36].mxu0 %v4683_v23 }
  0x77   : > { %1695 = vmatprep.mubr.bf16.mxu0 %v4726_v47 }
  0x78   : > { %1849 = vmatmul.mubr.bf16.gmra.mrb[36].mxu1 %v4730_v53 }
  0x79   : > { %1856 = vmatprep.mubr.bf16.mxu1 %v4733_v54 }
  0x7e   : > { %1696 = vmatmul.mubr.bf16.gmra.mrb[40].mxu0 %v4717_v40 }
  0x7f   : > { %1703 = vmatprep.mubr.bf16.mxu0 %v4742_v63 }
  0x80   : > { %1857 = vmatmul.mubr.bf16.gmra.mrb[40].mxu1 %v4746_v4 }
  0x81   : > { %1864 = vmatprep.mubr.bf16.mxu1 %v4749_v6 }
  0x86   : > { %1704 = vmatmul.mubr.bf16.gmra.mrb[44].mxu0 %v4733_v54 }
  0x87   : > { %1711 = vmatprep.mubr.bf16.mxu0 %v4758_v13 }
  0x88   : > { %1865 = vmatmul.mubr.bf16.gmra.mrb[44].mxu1 %v4762_v18 }
  0x89   : > { %1872 = vmatprep.mubr.bf16.mxu1 %v4765_v21 }
  0x8e   : > { %1712 = vmatmul.mubr.bf16.gmra.mrb[48].mxu0 %v4749_v6 }
  0x8f   : > { %1719 = vmatprep.mubr.bf16.mxu0 %v4774_v28 }
  0x90   : > { %1873 = vmatmul.mubr.bf16.gmra.mrb[48].mxu1 %v4778_v32 }
  0x91   : > { %1880 = vmatprep.mubr.bf16.mxu1 %v4781_v34 }
  0x96   : > { %1720 = vmatmul.mubr.bf16.gmra.mrb[52].mxu0 %v4765_v21 }
  0x97   : > { %1727 = vmatprep.mubr.bf16.mxu0 %v4790_v45 }
  0x98   : > { %1881 = vmatmul.mubr.bf16.gmra.mrb[52].mxu1 %v4794_v55 }
  0x99   : > { %1888 = vmatprep.mubr.bf16.mxu1 %v4797_v56 }
  0x9e   : > { %1728 = vmatmul.mubr.bf16.gmra.mrb[56].mxu0 %v4781_v34 }
  0x9f   : > { %1735 = vmatprep.mubr.bf16.mxu0 %v4806_v7 }
  0xa0   : > { %1889 = vmatmul.mubr.bf16.gmra.mrb[56].mxu1 %v4810_v12 }
  0xa1   : > { %1896 = vmatprep.mubr.bf16.mxu1 %v4813_v14 }
  0xa6   : > { %1736 = vmatmul.mubr.bf16.gmra.mrb[60].mxu0 %v4797_v56 }
  0xa7   : > { %1937 = vmatprep.mubr.bf16.mxu0 %v4513_v61  ;;  %v4207_v61 = vld [vmem:[%s5676_s1 + $0x218] sm:$0xff]  }
  0xa8   : > { %1897 = vmatmul.mubr.bf16.gmra.mrb[60].mxu1 %v4820_v25 }
  0xa9   : > { %2098 = vmatprep.mubr.bf16.mxu1 %v4508_v59 }
  0xae   : > { %1938 = vmatmul.mubr.bf16.vlgmr.msra.gmra.mrb[64].mxu0 %v4493_v50  ;;  %v4208_v50 = vld [vmem:[%s5676_s1 + $0x220] sm:$0xff]  }
  0xaf   : > { %3896 = vmatpush3.bf16.msra.mxu0 %v4708_v37  ;;  %1945 = vmatprep.mubr.bf16.mxu0 %v4534_v8  ;;  %v4894_v8 = vld [vmem:[%s5677_s2] ss:$0 sm:$0xff] }
  0xb0   : > { %3897 = vmatprep.subr.bf16.mxu0 %v4205_v26  ;;  %2099 = vmatmul.mubr.bf16.vlgmr.msra.gmra.mrb[64].mxu1 %v4495_v51  ;;  %v4209_v51 = vld [vmem:[%s5676_s1 + $0x228] sm:$0xff]  }
  0xb1   : > { %2106 = vmatprep.mubr.bf16.mxu1 %v4530_v5 }
  0xb3   : > { %3898 = vmatpush3.bf16.msra.mxu0 %v4205_v26  ;;  %v3199_v26 = vld [vmem:[%s4464_s19 + $0x18a] sm:$0xff] }
  0xb4   : > { %3899 = vmatprep.subr.bf16.mxu0 %v4206_v27 }
  0xb6   : > { %1946 = vmatmul.mubr.bf16.gmra.mrb[68].mxu0 %v4508_v59  ;;  %v4210_v59 = vld [vmem:[%s5676_s1 + $0x230] sm:$0xff]  }
  0xb7   : > { %1953 = vmatprep.mubr.bf16.mxu0 %v4559_v20  ;;  %3900 = vmatpush3.bf16.msra.mxu0 %v4206_v27 }
  0xb8   : > { %3901 = vmatprep.subr.bf16.mxu0 %v4207_v61  ;;  %2107 = vmatmul.mubr.bf16.gmra.mrb[68].mxu1 %v4515_v62  ;;  %v4211_v62 = vld [vmem:[%s5676_s1 + $0x238] sm:$0xff]  }
  0xb9   : > { %2114 = vmatprep.mubr.bf16.mxu1 %v4553_v17 }
  0xbb   : > { %3902 = vmatpush3.bf16.msra.mxu0 %v4207_v61 }
  0xbc   : > { %3903 = vmatprep.subr.bf16.mxu0 %v4208_v50 }
  0xbe   : > { %1954 = vmatmul.mubr.bf16.gmra.mrb[72].mxu0 %v4530_v5 }
  0xbf   : > { %1961 = vmatprep.mubr.bf16.mxu0 %v4587_v33  ;;  %3904 = vmatpush3.bf16.msra.mxu0 %v4208_v50 }
  0xc0   : > { %3905 = vmatprep.subr.bf16.mxu0 %v4209_v51  ;;  %2115 = vmatmul.mubr.bf16.gmra.mrb[72].mxu1 %v4537_v9 }
  0xc1   : > { %2122 = vmatprep.mubr.bf16.mxu1 %v4581_v30 }
  0xc3   : > { %3906 = vmatpush3.bf16.msra.mxu0 %v4209_v51 }
  0xc4   : > { %3907 = vmatprep.subr.bf16.mxu0 %v4210_v59 }
  0xc6   : > { %1962 = vmatmul.mubr.bf16.gmra.mrb[76].mxu0 %v4553_v17 }
  0xc7   : > { %1969 = vmatprep.mubr.bf16.mxu0 %v4615_v46  ;;  %3908 = vmatpush3.bf16.msra.mxu0 %v4210_v59  ;;  %v4930_v59 = vpack.c.bf16 %v3199_v26, %v3198_v24 }
  0xc8   : > { %3909 = vmatprep.subr.bf16.mxu0 %v4211_v62  ;;  %2123 = vmatmul.mubr.bf16.gmra.mrb[76].mxu1 %v4565_v22 }
  0xc9   : > { %2130 = vmatprep.mubr.bf16.mxu1 %v4609_v43 }
  0xcb   : > { %3910 = vmatpush3.bf16.msra.mxu0 %v4211_v62  ;;  %v3262_v62 = vld [vmem:[%s4464_s19 + $0x199] sm:$0xff] }
  0xce   : > { %1970 = vmatmul.mubr.bf16.gmra.mrb[80].mxu0 %v4581_v30 }
  0xcf   : > { %1977 = vmatprep.mubr.bf16.mxu0 %v4643_v0 }
  0xd0   : > { %2131 = vmatmul.mubr.bf16.gmra.mrb[80].mxu1 %v4593_v35 }
  0xd1   : > { %2138 = vmatprep.mubr.bf16.mxu1 %v4637_v58 }
  0xd6   : > { %1978 = vmatmul.mubr.bf16.gmra.mrb[84].mxu0 %v4609_v43 }
  0xd7   : > { %1985 = vmatprep.mubr.bf16.mxu0 %v4677_v19 }
  0xd8   : > { %2139 = vmatmul.mubr.bf16.gmra.mrb[84].mxu1 %v4621_v48 }
  0xd9   : > { %2146 = vmatprep.mubr.bf16.mxu1 %v4671_v15 }
  0xde   : > { %1986 = vmatmul.mubr.bf16.gmra.mrb[88].mxu0 %v4637_v58 }
  0xdf   : > { %1993 = vmatprep.mubr.bf16.mxu0 %v4713_v39 }
  0xe0   : > { %2147 = vmatmul.mubr.bf16.gmra.mrb[88].mxu1 %v4649_v2 }
  0xe1   : > { %2154 = vmatprep.mubr.bf16.mxu1 %v4703_v36 }
  0xe6   : > { %1994 = vmatmul.mubr.bf16.gmra.mrb[92].mxu0 %v4671_v15 }
  0xe7   : > { %2001 = vmatprep.mubr.bf16.mxu0 %v4730_v53 }
  0xe8   : > { %2155 = vmatmul.mubr.bf16.gmra.mrb[92].mxu1 %v4683_v23 }
  0xe9   : > { %2162 = vmatprep.mubr.bf16.mxu1 %v4726_v47 }
  0xee   : > { %2002 = vmatmul.mubr.bf16.gmra.mrb[96].mxu0 %v4703_v36 }
  0xef   : > { %2009 = vmatprep.mubr.bf16.mxu0 %v4746_v4 }
  0xf0   : > { %2163 = vmatmul.mubr.bf16.gmra.mrb[96].mxu1 %v4717_v40 }
  0xf1   : > { %2170 = vmatprep.mubr.bf16.mxu1 %v4742_v63 }
  0xf6   : > { %2010 = vmatmul.mubr.bf16.gmra.mrb[100].mxu0 %v4726_v47 }
  0xf7   : > { %2017 = vmatprep.mubr.bf16.mxu0 %v4762_v18 }
  0xf8   : > { %2171 = vmatmul.mubr.bf16.gmra.mrb[100].mxu1 %v4733_v54 }
  0xf9   : > { %2178 = vmatprep.mubr.bf16.mxu1 %v4758_v13 }
  0xfe   : > { %2018 = vmatmul.mubr.bf16.gmra.mrb[104].mxu0 %v4742_v63 }
  0xff   : > { %2025 = vmatprep.mubr.bf16.mxu0 %v4778_v32 }
 0x100   : > { %2179 = vmatmul.mubr.bf16.gmra.mrb[104].mxu1 %v4749_v6 }
 0x101   : > { %v3395_v5 = vpop.f32.mrb[0].mxu0  ;;  %2186 = vmatprep.mubr.bf16.mxu1 %v4774_v28 }
 0x102   : > { %v3396_v9 = vpop.f32.mrb[1].mxu0 }
 0x103   : > { %v3397_v17 = vadd.f32 %v3396_v9, %v3395_v5  ;;  %v3398_v20 = vpop.f32.mrb[2].mxu0  ;;  %v3507_v22 = vpop.f32.mrb[0].mxu1  ;;  %v3263_v5 = vld [vmem:[%s4464_s19 + $0x1a1] sm:$0xff] }
 0x104   : > { %v3399_v30 = vpop.f32.mrb[3].mxu0  ;;  %v3508_v43 = vpop.f32.mrb[1].mxu1 }
 0x105   : > { %v1618_v33 = vadd.f32 %v3397_v17, %v4894_v8  ;;  %v3400_v35 = vadd.f32 %v3399_v30, %v3398_v20  ;;  %v3509_v46 = vadd.f32 %v3508_v43, %v3507_v22  ;;  %v3510_v48 = vpop.f32.mrb[2].mxu1 }
 0x106   : > { %2026 = vmatmul.mubr.bf16.gmra.mrb[108].mxu0 %v4758_v13  ;;  %v3511_v0 = vpop.f32.mrb[3].mxu1 }
 0x107   : > { %v1621_v58 = vadd.f32 %v3400_v35, %v4894_v8  ;;  %2033 = vmatprep.mubr.bf16.mxu0 %v4794_v55  ;;  %v4901_v2 = vadd.f32 %v3509_v46, %v1618_v33  ;;  %v3512_v15 = vadd.f32 %v3511_v0, %v3510_v48  ;;  %v775_v33 = vpack.c.bf16 %v3263_v5, %v3262_v62  ;;  %v3265_v0 = vld [vmem:[%s4464_s19 + $0x3a] sm:$0xff]  ;;  %v3271_v5 = vld [vmem:[%s4464_s19 + $0x82] sm:$0xff] }
 0x108   : > { %2187 = vmatmul.mubr.bf16.gmra.mrb[108].mxu1 %v4765_v21  ;;  %v3270_v62 = vld [vmem:[%s4464_s19 + $0x7a] sm:$0xff] }
 0x109   : > { %v3401_v19 = vpop.f32.mrb[4].mxu0  ;;  %v4904_v23 = vadd.f32 %v3512_v15, %v1621_v58  ;;  %2194 = vmatprep.mubr.bf16.mxu1 %v4790_v45  ;;  %v3264_v58 = vld [vmem:[%s4464_s19 + $0x32] sm:$0xff] }
 0x10a   : > { %v3402_v36 = vpop.f32.mrb[5].mxu0 }
 0x10b   : > { %v3403_v37 = vadd.f32 %v3402_v36, %v3401_v19  ;;  %v3404_v39 = vpop.f32.mrb[6].mxu0  ;;  %v3513_v40 = vpop.f32.mrb[4].mxu1 }
 0x10c   : > { %v3405_v47 = vpop.f32.mrb[7].mxu0  ;;  %v3514_v63 = vpop.f32.mrb[5].mxu1 }
 0x10d   : > { %v1626_v53 = vadd.f32 %v3403_v37, %v4894_v8  ;;  %v3406_v54 = vadd.f32 %v3405_v47, %v3404_v39  ;;  %v3515_v4 = vadd.f32 %v3514_v63, %v3513_v40  ;;  %v3516_v6 = vpop.f32.mrb[6].mxu1  ;;  %v3230_v37 = vld [vmem:[%s4464_s19 + $0x198] sm:$0xff]  ;;  %v824_v47 = vpack.c.bf16 %v3265_v0, %v3264_v58 }
 0x10e   : > { %2034 = vmatmul.mubr.bf16.gmra.mrb[112].mxu0 %v4774_v28  ;;  %v3517_v18 = vpop.f32.mrb[7].mxu1  ;;  %v3261_v28 = vld [vmem:[%s4464_s19 + $0x189] sm:$0xff] }
 0x10f   : > { %v1629_v13 = vadd.f32 %v3406_v54, %v4894_v8  ;;  %2041 = vmatprep.mubr.bf16.mxu0 %v4810_v12  ;;  %v4911_v21 = vadd.f32 %v3515_v4, %v1626_v53  ;;  %v3518_v29 = vadd.f32 %v3517_v18, %v3516_v6  ;;  %v774_v3 = vpack.c.bf16 %v3261_v28, %v3260_v44  ;;  %v3268_v28 = vld [vmem:[%s4464_s19 + $0x62] sm:$0xff] }
 0x110   : > { %2195 = vmatmul.mubr.bf16.gmra.mrb[112].mxu1 %v4781_v34 }
 0x111   : > { %v3407_v31 = vpop.f32.mrb[8].mxu0  ;;  %v4914_v32 = vadd.f32 %v3518_v29, %v1629_v13  ;;  %2202 = vmatprep.mubr.bf16.mxu1 %v4806_v7 }
 0x112   : > { %v3408_v38 = vpop.f32.mrb[9].mxu0 }
 0x113   : > { %v3409_v41 = vadd.f32 %v3408_v38, %v3407_v31  ;;  %v3410_v42 = vpop.f32.mrb[10].mxu0  ;;  %v3519_v49 = vpop.f32.mrb[8].mxu1  ;;  %v3266_v38 = vld [vmem:[%s4464_s19 + $0x4a] sm:$0xff] }
 0x114   : > { %v3411_v52 = vpop.f32.mrb[11].mxu0  ;;  %v3520_v60 = vpop.f32.mrb[9].mxu1 }
 0x115   : > { %v1634_v55 = vadd.f32 %v3409_v41, %v4894_v8  ;;  %v3412_v57 = vadd.f32 %v3411_v52, %v3410_v42  ;;  %v3521_v1 = vadd.f32 %v3520_v60, %v3519_v49  ;;  %v3522_v34 = vpop.f32.mrb[10].mxu1  ;;  %v3267_v41 = vld [vmem:[%s4464_s19 + $0x52] sm:$0xff]  ;;  %v3269_v49 = vld [vmem:[%s4464_s19 + $0x6a] sm:$0xff] }
 0x116   : > { %2042 = vmatmul.mubr.bf16.gmra.mrb[116].mxu0 %v4790_v45  ;;  %v3523_v11 = vpop.f32.mrb[11].mxu1  ;;  %v825_v60 = vpack.c.bf16 %v3267_v41, %v3266_v38 }
 0x117   : > { %v1637_v10 = vadd.f32 %v3412_v57, %v4894_v8  ;;  %2049 = vmatprep.mubr.bf16.mxu0 %v4820_v25  ;;  %v4923_v12 = vadd.f32 %v3521_v1, %v1634_v55  ;;  %v3524_v16 = vadd.f32 %v3523_v11, %v3522_v34 }
 0x118   : > { %2203 = vmatmul.mubr.bf16.gmra.mrb[116].mxu1 %v4797_v56 }
 0x119   : > { %v3413_v27 = vpop.f32.mrb[12].mxu0  ;;  %v4928_v61 = vadd.f32 %v3524_v16, %v1637_v10  ;;  %2210 = vmatprep.mubr.bf16.mxu1 %v774_v3 }
 0x11a   : > { %v3414_v50 = vpop.f32.mrb[13].mxu0 }
 0x11b   : > { %v3415_v45 = vadd.f32 %v3414_v50, %v3413_v27  ;;  %v3416_v51 = vpop.f32.mrb[14].mxu0  ;;  %v3525_v25 = vpop.f32.mrb[12].mxu1 }
 0x11c   : > { %v3417_v9 = vpop.f32.mrb[15].mxu0  ;;  %v3526_v22 = vpop.f32.mrb[13].mxu1 }
 0x11d   : > { %v1642_v17 = vadd.f32 %v3415_v45, %v4894_v8  ;;  %v3418_v20 = vadd.f32 %v3417_v9, %v3416_v51  ;;  %v3527_v56 = vadd.f32 %v3526_v22, %v3525_v25  ;;  %v3528_v30 = vpop.f32.mrb[14].mxu1 }
 0x11e   : > { %2050 = vmatmul.mubr.bf16.gmra.mrb[120].mxu0 %v4806_v7  ;;  %v3529_v43 = vpop.f32.mrb[15].mxu1  ;;  %v3231_v7 = vld [vmem:[%s4464_s19 + $0x1a0] sm:$0xff] }
 0x11f   : > { %v1645_v35 = vadd.f32 %v3418_v20, %v4894_v8  ;;  %2057 = vmatprep.mubr.bf16.mxu0 %v4930_v59  ;;  %v4938_v46 = vadd.f32 %v3527_v56, %v1642_v17  ;;  %v3530_v48 = vadd.f32 %v3529_v43, %v3528_v30  ;;  %v711_v6 = vpack.c.bf16 %v3231_v7, %v3230_v37  ;;  %v3272_v17 = vld [vmem:[%s4464_s19 + $0x92] sm:$0xff]  ;;  %v3273_v20 = vld [vmem:[%s4464_s19 + $0x9a] sm:$0xff] }
 0x120   : > { %2211 = vmatmul.mubr.bf16.gmra.mrb[120].mxu1 %v4813_v14 }
 0x121   : > { %v3419_v15 = vpop.f32.mrb[16].mxu0  ;;  %v4943_v19 = vadd.f32 %v3530_v48, %v1645_v35  ;;  %2218 = vmatprep.mubr.bf16.mxu1 %v775_v33  ;;  %v827_v33 = vpack.c.bf16 %v3271_v5, %v3270_v62  ;;  %v828_v48 = vpack.c.bf16 %v3273_v20, %v3272_v17 }
 0x122   : > { %v3420_v36 = vpop.f32.mrb[17].mxu0 }
 0x123   : > { %v3421_v39 = vadd.f32 %v3420_v36, %v3419_v15  ;;  %v3422_v40 = vpop.f32.mrb[18].mxu0  ;;  %v3531_v53 = vpop.f32.mrb[16].mxu1 }
 0x124   : > { %v3423_v54 = vpop.f32.mrb[19].mxu0  ;;  %v3532_v14 = vpop.f32.mrb[17].mxu1 }
 0x125   : > { %v1650_v63 = vadd.f32 %v3421_v39, %v4894_v8  ;;  %v3424_v4 = vadd.f32 %v3423_v54, %v3422_v40  ;;  %v3533_v13 = vadd.f32 %v3532_v14, %v3531_v53  ;;  %v3534_v18 = vpop.f32.mrb[18].mxu1  ;;  %v3274_v53 = vld [vmem:[%s4464_s19 + $0xaa] sm:$0xff]  ;;  %v3275_v54 = vld [vmem:[%s4464_s19 + $0xb2] sm:$0xff]  ;;  %v3276_v14 = vld [vmem:[%s4464_s19 + $0xc2] sm:$0xff] }
 0x126   : > { %2058 = vmatmul.mubr.bf16.gmra.mrb[124].mxu0 %v774_v3  ;;  %v3535_v31 = vpop.f32.mrb[19].mxu1  ;;  %v826_v3 = vpack.c.bf16 %v3269_v49, %v3268_v28 }
 0x127   : > { %v1653_v29 = vadd.f32 %v3424_v4, %v4894_v8  ;;  %3911 = vmatprep.mubr.bf16.mxu0 %v824_v47  ;;  %v4951_v42 = vadd.f32 %v3533_v13, %v1650_v63  ;;  %v3536_v44 = vadd.f32 %v3535_v31, %v3534_v18  ;;  %v829_v31 = vpack.c.bf16 %v3275_v54, %v3274_v53 }
 0x128   : > { %2219 = vmatmul.mubr.bf16.gmra.mrb[124].mxu1 %v711_v6  ;;  %v3277_v6 = vld [vmem:[%s4464_s19 + $0xca] sm:$0xff] }
 0x129   : > { %v3425_v52 = vpop.f32.mrb[20].mxu0  ;;  %v4955_v55 = vadd.f32 %v3536_v44, %v1653_v29  ;;  %v830_v44 = vpack.c.bf16 %v3277_v6, %v3276_v14 }
 0x12a   : > { %v3426_v57 = vpop.f32.mrb[21].mxu0 }
 0x12b   : > { %v3427_v1 = vadd.f32 %v3426_v57, %v3425_v52  ;;  %v3428_v34 = vpop.f32.mrb[22].mxu0  ;;  %v3537_v10 = vpop.f32.mrb[20].mxu1 }
 0x12c   : > { %v3429_v11 = vpop.f32.mrb[23].mxu0  ;;  %v3538_v26 = vpop.f32.mrb[21].mxu1 }
 0x12d   : > { %v1658_v16 = vadd.f32 %v3427_v1, %v4894_v8  ;;  %v3430_v24 = vadd.f32 %v3429_v11, %v3428_v34  ;;  %v3539_v27 = vadd.f32 %v3538_v26, %v3537_v10  ;;  %v3540_v50 = vpop.f32.mrb[22].mxu1  ;;  %v3278_v11 = vld [vmem:[%s4464_s19 + $0xda] sm:$0xff] }
 0x12e   : > { %3912 = vmatmul.mubr.bf16.vlgmr.msra.gmra.mrb[128].mxu0 %v825_v60  ;;  %v3541_v51 = vpop.f32.mrb[23].mxu1 }
 0x12f   : > { %v1661_v45 = vadd.f32 %v3430_v24, %v4894_v8  ;;  %3915 = vmatprep.mubr.bf16.mxu0 %v826_v3  ;;  %v4961_v25 = vadd.f32 %v3539_v27, %v1658_v16  ;;  %v3542_v9 = vadd.f32 %v3541_v51, %v3540_v50  ;;  %v3279_v16 = vld [vmem:[%s4464_s19 + $0xe2] sm:$0xff]  ;;  %v3280_v27 = vld [vmem:[%s4464_s19 + $0xf2] sm:$0xff]  ;;  %v3281_v50 = vld [vmem:[%s4464_s19 + $0xfa] sm:$0xff] }
 0x130   : > { %v831_v5 = vpack.c.bf16 %v3279_v16, %v3278_v11  ;;  %v832_v20 = vpack.c.bf16 %v3281_v50, %v3280_v27  ;;  %v3288_v11 = vld [vmem:[%s4464_s19 + $0x152] sm:$0xff]  ;;  %v3289_v16 = vld [vmem:[%s4464_s19 + $0x15a] sm:$0xff] }
 0x131   : > { %v3431_v22 = vpop.f32.mrb[24].mxu0  ;;  %v4965_v56 = vadd.f32 %v3542_v9, %v1661_v45 }
 0x132   : > { %v3432_v30 = vpop.f32.mrb[25].mxu0 }
 0x133   : > { %v3433_v35 = vadd.f32 %v3432_v30, %v3431_v22  ;;  %v3434_v43 = vpop.f32.mrb[26].mxu0  ;;  %v3543_v58 = vpop.f32.mrb[24].mxu1 }
 0x134   : > { %v3435_v0 = vpop.f32.mrb[27].mxu0  ;;  %v3544_v37 = vpop.f32.mrb[25].mxu1 }
 0x135   : > { %v1666_v15 = vadd.f32 %v3433_v35, %v4894_v8  ;;  %v3436_v36 = vadd.f32 %v3435_v0, %v3434_v43  ;;  %v3545_v7 = vadd.f32 %v3544_v37, %v3543_v58  ;;  %v3546_v39 = vpop.f32.mrb[26].mxu1  ;;  %v3283_v37 = vld [vmem:[%s4464_s19 + $0x112] sm:$0xff] }
 0x136   : > { %3916 = vmatmul.mubr.bf16.gmra.mrb[132].mxu0 %v827_v33  ;;  %v3547_v47 = vpop.f32.mrb[27].mxu1 }
 0x137   : > { %v1669_v40 = vadd.f32 %v3436_v36, %v4894_v8  ;;  %3919 = vmatprep.mubr.bf16.mxu0 %v828_v48  ;;  %v4971_v63 = vadd.f32 %v3545_v7, %v1666_v15  ;;  %v3548_v4 = vadd.f32 %v3547_v47, %v3546_v39  ;;  %v3282_v36 = vld [vmem:[%s4464_s19 + $0x10a] sm:$0xff] }
 0x138   : > { %v3285_v47 = vld [vmem:[%s4464_s19 + $0x12a] sm:$0xff]  ;;  %v833_v14 = vpack.c.bf16 %v3283_v37, %v3282_v36 }
 0x139   : > { %v3437_v13 = vpop.f32.mrb[28].mxu0  ;;  %v4975_v18 = vadd.f32 %v3548_v4, %v1669_v40  ;;  %v3284_v40 = vld [vmem:[%s4464_s19 + $0x122] sm:$0xff] }
 0x13a   : > { %v3438_v29 = vpop.f32.mrb[29].mxu0 }
 0x13b   : > { %v3439_v38 = vadd.f32 %v3438_v29, %v3437_v13  ;;  %v3440_v41 = vpop.f32.mrb[30].mxu0  ;;  %v3549_v28 = vpop.f32.mrb[28].mxu1  ;;  %v834_v29 = vpack.c.bf16 %v3285_v47, %v3284_v40  ;;  %v3291_v40 = vld [vmem:[%s4464_s19 + $0x172] sm:$0xff] }
 0x13c   : > { %v3441_v49 = vpop.f32.mrb[31].mxu0  ;;  %v3550_v60 = vpop.f32.mrb[29].mxu1 }
 0x13d   : > { %v1674_v52 = vadd.f32 %v3439_v38, %v4894_v8  ;;  %v3442_v57 = vadd.f32 %v3441_v49, %v3440_v41  ;;  %v3551_v1 = vadd.f32 %v3550_v60, %v3549_v28  ;;  %v3552_v34 = vpop.f32.mrb[30].mxu1 }
 0x13e   : > { %3920 = vmatmul.mubr.bf16.gmra.mrb[136].mxu0 %v829_v31  ;;  %v3553_v10 = vpop.f32.mrb[31].mxu1 }
 0x13f   : > { %v1677_v3 = vadd.f32 %v3442_v57, %v4894_v8  ;;  %3923 = vmatprep.mubr.bf16.mxu0 %v830_v44  ;;  %v4981_v24 = vadd.f32 %v3551_v1, %v1674_v52  ;;  %v3554_v26 = vadd.f32 %v3553_v10, %v3552_v34  ;;  %v3286_v1 = vld [vmem:[%s4464_s19 + $0x13a] sm:$0xff]  ;;  %v3287_v34 = vld [vmem:[%s4464_s19 + $0x142] sm:$0xff] }
 0x141   : > { %v3443_v45 = vpop.f32.mrb[32].mxu0  ;;  %v4985_v51 = vadd.f32 %v3554_v26, %v1677_v3 }
 0x142   : > { %v3444_v62 = vpop.f32.mrb[33].mxu0 }
 0x143   : > { %v3445_v9 = vadd.f32 %v3444_v62, %v3443_v45  ;;  %v3446_v17 = vpop.f32.mrb[34].mxu0  ;;  %v3555_v22 = vpop.f32.mrb[32].mxu1  ;;  %v835_v45 = vpack.c.bf16 %v3287_v34, %v3286_v1  ;;  %v4278_v62 = vmov 0.0|0.0   ;;  %v3294_v34 = vld [vmem:[%s4464_s19 + $0x19a] sm:$0xff] }
 0x144   : > { %v3447_v30 = vpop.f32.mrb[35].mxu0  ;;  %v3556_v43 = vpop.f32.mrb[33].mxu1  ;;  %4035 = vmatprep.subr.bf16.mxu1 %v4278_v62 }
 0x145   : > { %v1682_v33 = vadd.f32 %v3445_v9, %v4894_v8  ;;  %v3448_v35 = vadd.f32 %v3447_v30, %v3446_v17  ;;  %v3557_v48 = vadd.f32 %v3556_v43, %v3555_v22  ;;  %v3558_v58 = vpop.f32.mrb[34].mxu1  ;;  %v836_v17 = vpack.c.bf16 %v3289_v16, %v3288_v11  ;;  %v2494_v43 = vld [vmem:[%s5680_s5] sm:$0xff] }
 0x146   : > { %3924 = vmatmul.mubr.bf16.gmra.mrb[140].mxu0 %v831_v5  ;;  %v3559_v15 = vpop.f32.mrb[35].mxu1 }
 0x147   : > { %v1685_v0 = vadd.f32 %v3448_v35, %v4894_v8  ;;  %3927 = vmatprep.mubr.bf16.mxu0 %v832_v20  ;;  %v4991_v7 = vadd.f32 %v3557_v48, %v1682_v33  ;;  %v3560_v39 = vadd.f32 %v3559_v15, %v3558_v58  ;;  %v2495_v48 = vld [vmem:[%s5680_s5 + $0x8] sm:$0xff] }
 0x148   : > { %v5015_v15 = vpack.c.bf16 %v2495_v48, %v2494_v43  ;;  %v2497_v43 = vld [vmem:[%s5680_s5 + $0x18] sm:$0xff] }
 0x149   : > { %v3449_v53 = vpop.f32.mrb[36].mxu0  ;;  %v4995_v54 = vadd.f32 %v3560_v39, %v1685_v0  ;;  %v3290_v39 = vld [vmem:[%s4464_s19 + $0x16a] sm:$0xff] }
 0x14a   : > { %v3450_v4 = vpop.f32.mrb[37].mxu0  ;;  %4037 = vmatpush3.bf16.msra.mxu1 %v5015_v15 }
 0x14b   : > { %v3451_v6 = vadd.f32 %v3450_v4, %v3449_v53  ;;  %v3452_v13 = vpop.f32.mrb[38].mxu0  ;;  %v3561_v31 = vpop.f32.mrb[36].mxu1  ;;  %4038 = vmatprep.subr.bf16.mxu1 %v4278_v62 }
 0x14c   : > { %v3453_v38 = vpop.f32.mrb[39].mxu0  ;;  %v3562_v28 = vpop.f32.mrb[37].mxu1 }
 0x14d   : > { %v1690_v41 = vadd.f32 %v3451_v6, %v4894_v8  ;;  %v3454_v44 = vadd.f32 %v3453_v38, %v3452_v13  ;;  %v3563_v49 = vadd.f32 %v3562_v28, %v3561_v31  ;;  %v3564_v52 = vpop.f32.mrb[38].mxu1  ;;  %v837_v13 = vpack.c.bf16 %v3291_v40, %v3290_v39 }
 0x14e   : > { %3928 = vmatmul.mubr.bf16.gmra.mrb[144].mxu0 %v833_v14  ;;  %v3565_v60 = vpop.f32.mrb[39].mxu1 }
 0x14f   : > { %v1693_v57 = vadd.f32 %v3454_v44, %v4894_v8  ;;  %3931 = vmatprep.mubr.bf16.mxu0 %v834_v29  ;;  %v5001_v3 = vadd.f32 %v3563_v49, %v1690_v41  ;;  %v3566_v10 = vadd.f32 %v3565_v60, %v3564_v52 }
 0x151   : > { %v3455_v26 = vpop.f32.mrb[40].mxu0  ;;  %v5005_v27 = vadd.f32 %v3566_v10, %v1693_v57  ;;  %v3295_v10 = vld [vmem:[%s4464_s19 + $0x1a2] sm:$0xff]  ;;  %s3036_s19 = sshll.u32 %s5573_s21, 4  ;;  %s5614_s19 = int_to_ptr.vmem [resolvable:$true] %s3036_s19 }
 0x152   : > { %v3456_v50 = vpop.f32.mrb[41].mxu0  ;;  %s4214_s9 = scalar_lea.vmem %s5614_s19, 4096  ;;  %p4221_p0 = scmp.lt.s32.totalorder %s5614_s19, %s4219_s15 }
 0x153   : > { %v3457_v5 = vadd.f32 %v3456_v50, %v3455_v26  ;;  %v3458_v9 = vpop.f32.mrb[42].mxu0  ;;  %v3567_v20 = vpop.f32.mrb[40].mxu1  ;;  %p4215_p11 = scmp.ne.s32.totalorder %s5614_s19, %s4214_s9  ;;  %p4222_p1 = scmp.lt.s32.totalorder %s4220_s16, %s4214_s9 }
 0x154   : > { %v3459_v22 = vpop.f32.mrb[43].mxu0  ;;  %v3568_v35 = vpop.f32.mrb[41].mxu1 }
 0x155   : > { %v1698_v30 = vadd.f32 %v3457_v5, %v4894_v8  ;;  %v3460_v33 = vadd.f32 %v3459_v22, %v3458_v9  ;;  %v3569_v58 = vadd.f32 %v3568_v35, %v3567_v20  ;;  %v3570_v0 = vpop.f32.mrb[42].mxu1  ;;  %v839_v5 = vpack.c.bf16 %v3295_v10, %v3294_v34  ;;  %p4216_p12 = pnand %p4215_p11, %p4362_p5  ;;  %p4223_p2 = por %p4222_p1, %p4221_p0 }
 0x156   : > { %3932 = vmatmul.mubr.bf16.gmra.mrb[148].mxu0 %v835_v45  ;;  %v3571_v37 = vpop.f32.mrb[43].mxu1 }
 0x157   : > { %v1701_v36 = vadd.f32 %v3460_v33, %v4894_v8  ;;  %3935 = vmatprep.mubr.bf16.mxu0 %v836_v17  ;;  %v5020_v47 = vadd.f32 %v3569_v58, %v1698_v30  ;;  %v3572_v53 = vadd.f32 %v3571_v37, %v3570_v0  ;;  %p4217_p13 = pneg %p4216_p12 }
 0x159   : > { %v3461_v4 = vpop.f32.mrb[44].mxu0  ;;  %v5024_v14 = vadd.f32 %v3572_v53, %v1701_v36  ;;  %p4224_p3 = pnand %p4223_p2, %p4217_p13 }
 0x15a   : > { %v3462_v6 = vpop.f32.mrb[45].mxu0 }
 0x15b   : > { %v3463_v29 = vadd.f32 %v3462_v6, %v3461_v4  ;;  %v3464_v31 = vpop.f32.mrb[46].mxu0  ;;  %v3573_v38 = vpop.f32.mrb[44].mxu1 }
 0x15c   : > { %v3465_v41 = vpop.f32.mrb[47].mxu0  ;;  %v3574_v49 = vpop.f32.mrb[45].mxu1 }
 0x15d   : > { %v1706_v44 = vadd.f32 %v3463_v29, %v4894_v8  ;;  %v3466_v28 = vadd.f32 %v3465_v41, %v3464_v31  ;;  %v3575_v52 = vadd.f32 %v3574_v49, %v3573_v38  ;;  %v3576_v57 = vpop.f32.mrb[46].mxu1 }
 0x15e   : > { %3936 = vmatmul.mubr.bf16.gmra.mrb[152].mxu0 %v837_v13  ;;  %v3577_v1 = vpop.f32.mrb[47].mxu1 }
 0x15f   : > { %v1709_v60 = vadd.f32 %v3466_v28, %v4894_v8  ;;  %3939 = vmatprep.mubr.bf16.mxu0 %v4930_v59  ;;  %v5031_v11 = vadd.f32 %v3575_v52, %v1706_v44  ;;  %v3578_v16 = vadd.f32 %v3577_v1, %v3576_v57  ;;  %v2496_v59 = vld [vmem:[%s5680_s5 + $0x10] sm:$0xff] }
 0x160   : > { %v5042_v0 = vpack.c.bf16 %v2497_v43, %v2496_v59 }
 0x161   : > { %v3467_v26 = vpop.f32.mrb[48].mxu0  ;;  %v5033_v50 = vadd.f32 %v3578_v16, %v1709_v60 }
 0x162   : > { %v3468_v45 = vpop.f32.mrb[49].mxu0  ;;  %4040 = vmatpush3.bf16.msra.mxu1 %v5042_v0 }
 0x163   : > { %v3469_v9 = vadd.f32 %v3468_v45, %v3467_v26  ;;  %v3470_v17 = vpop.f32.mrb[50].mxu0  ;;  %v3579_v20 = vpop.f32.mrb[48].mxu1  ;;  %4041 = vmatprep.subr.bf16.mxu1 %v4278_v62 }
 0x164   : > { %v3471_v22 = vpop.f32.mrb[51].mxu0  ;;  %v3580_v35 = vpop.f32.mrb[49].mxu1 }
 0x165   : > { %v1714_v30 = vadd.f32 %v3469_v9, %v4894_v8  ;;  %v3472_v33 = vadd.f32 %v3471_v22, %v3470_v17  ;;  %v3581_v48 = vadd.f32 %v3580_v35, %v3579_v20  ;;  %v3582_v58 = vpop.f32.mrb[50].mxu1  ;;  %v2499_v35 = vld [vmem:[%s5680_s5 + $0x28] sm:$0xff] }
 0x166   : > { %3940 = vmatmul.mubr.bf16.gmra.mrb[156].mxu0 %v839_v5  ;;  %v3583_v37 = vpop.f32.mrb[51].mxu1 }
 0x167   : > { %v1717_v36 = vadd.f32 %v3472_v33, %v4894_v8  ;;  %v5045_v39 = vadd.f32 %v3581_v48, %v1714_v30  ;;  %v3584_v40 = vadd.f32 %v3583_v37, %v3582_v58  ;;  %v2498_v33 = vld [vmem:[%s5680_s5 + $0x20] sm:$0xff] }
 0x168   : > { %v5064_v48 = vpack.c.bf16 %v2499_v35, %v2498_v33 }
 0x169   : > { %v3473_v53 = vpop.f32.mrb[52].mxu0  ;;  %v5049_v4 = vadd.f32 %v3584_v40, %v1717_v36 }
 0x16a   : > { %v3474_v6 = vpop.f32.mrb[53].mxu0  ;;  %4043 = vmatpush3.bf16.msra.mxu1 %v5064_v48 }
 0x16b   : > { %v3475_v13 = vadd.f32 %v3474_v6, %v3473_v53  ;;  %v3476_v29 = vpop.f32.mrb[54].mxu0  ;;  %v3585_v31 = vpop.f32.mrb[52].mxu1  ;;  %4044 = vmatprep.subr.bf16.mxu1 %v4278_v62 }
 0x16c   : > { %v3477_v38 = vpop.f32.mrb[55].mxu0  ;;  %v3586_v28 = vpop.f32.mrb[53].mxu1 }
 0x16d   : > { %v1722_v41 = vadd.f32 %v3475_v13, %v4894_v8  ;;  %v3478_v44 = vadd.f32 %v3477_v38, %v3476_v29  ;;  %v3587_v49 = vadd.f32 %v3586_v28, %v3585_v31  ;;  %v3588_v52 = vpop.f32.mrb[54].mxu1 }
 0x16e   : > { %v3589_v60 = vpop.f32.mrb[55].mxu1 }
 0x16f   : > { %v1725_v57 = vadd.f32 %v3478_v44, %v4894_v8  ;;  %v5053_v1 = vadd.f32 %v3587_v49, %v1722_v41  ;;  %v3590_v34 = vadd.f32 %v3589_v60, %v3588_v52 }
 0x171   : > { %v3479_v10 = vpop.f32.mrb[56].mxu0  ;;  %v5055_v16 = vadd.f32 %v3590_v34, %v1725_v57 }
 0x172   : > { %v3480_v26 = vpop.f32.mrb[57].mxu0 }
 0x173   : > { %v3481_v45 = vadd.f32 %v3480_v26, %v3479_v10  ;;  %v3482_v5 = vpop.f32.mrb[58].mxu0  ;;  %v3591_v9 = vpop.f32.mrb[56].mxu1 }
 0x174   : > { %v3483_v17 = vpop.f32.mrb[59].mxu0  ;;  %v3592_v30 = vpop.f32.mrb[57].mxu1 }
 0x175   : > { %v1730_v20 = vadd.f32 %v3481_v45, %v4894_v8  ;;  %v3484_v22 = vadd.f32 %v3483_v17, %v3482_v5  ;;  %v3593_v59 = vadd.f32 %v3592_v30, %v3591_v9  ;;  %v3594_v43 = vpop.f32.mrb[58].mxu1 }
 0x176   : > { %v3595_v36 = vpop.f32.mrb[59].mxu1 }
 0x177   : > { %v1733_v58 = vadd.f32 %v3484_v22, %v4894_v8  ;;  %v5067_v37 = vadd.f32 %v3593_v59, %v1730_v20  ;;  %v3596_v40 = vadd.f32 %v3595_v36, %v3594_v43  ;;  %v2501_v43 = vld [vmem:[%s5680_s5 + $0x38] sm:$0xff] }
 0x179   : > { %v3485_v53 = vpop.f32.mrb[60].mxu0  ;;  %v5071_v6 = vadd.f32 %v3596_v40, %v1733_v58 }
 0x17a   : > { %v3486_v13 = vpop.f32.mrb[61].mxu0 }
 0x17b   : > { %v3487_v29 = vadd.f32 %v3486_v13, %v3485_v53  ;;  %v3488_v31 = vpop.f32.mrb[62].mxu0  ;;  %v3597_v38 = vpop.f32.mrb[60].mxu1 }
 0x17c   : > { %v3489_v41 = vpop.f32.mrb[63].mxu0  ;;  %v3598_v49 = vpop.f32.mrb[61].mxu1 }
 0x17d   : > { %v1738_v44 = vadd.f32 %v3487_v29, %v4894_v8  ;;  %v3490_v28 = vadd.f32 %v3489_v41, %v3488_v31  ;;  %v3599_v52 = vadd.f32 %v3598_v49, %v3597_v38  ;;  %v3600_v57 = vpop.f32.mrb[62].mxu1 }
 0x17e   : > { %v3601_v34 = vpop.f32.mrb[63].mxu1 }
 0x17f   : > { %v1741_v60 = vadd.f32 %v3490_v28, %v4894_v8  ;;  %v5075_v10 = vadd.f32 %v3599_v52, %v1738_v44  ;;  %v3602_v26 = vadd.f32 %v3601_v34, %v3600_v57  ;;  %v2500_v8 = vld [vmem:[%s5680_s5 + $0x30] sm:$0xff] }
 0x180   : > { %v5086_v40 = vpack.c.bf16 %v2501_v43, %v2500_v8 }
 0x181   : > { %v3619_v45 = vpop.f32.mrb[64].mxu0  ;;  %v5077_v5 = vadd.f32 %v3602_v26, %v1741_v60 }
 0x182   : > { %v3620_v9 = vpop.f32.mrb[65].mxu0  ;;  %4046 = vmatpush3.bf16.msra.mxu1 %v5086_v40 }
 0x183   : > { %v3621_v17 = vadd.f32 %v3620_v9, %v3619_v45  ;;  %v3622_v20 = vpop.f32.mrb[66].mxu0  ;;  %v3731_v22 = vpop.f32.mrb[64].mxu1  ;;  %4047 = vmatprep.subr.bf16.mxu1 %v4278_v62 }
 0x184   : > { %v3623_v30 = vpop.f32.mrb[67].mxu0  ;;  %v3732_v59 = vpop.f32.mrb[65].mxu1 }
 0x185   : > { %v1940_v33 = vadd.f32 %v3621_v17, %v4901_v2  ;;  %v3624_v35 = vadd.f32 %v3623_v30, %v3622_v20  ;;  %v3733_v58 = vadd.f32 %v3732_v59, %v3731_v22  ;;  %v3734_v36 = vpop.f32.mrb[66].mxu1 }
 0x186   : > { %v3735_v13 = vpop.f32.mrb[67].mxu1 }
 0x187   : > { %v1943_v53 = vadd.f32 %v3624_v35, %v4904_v23  ;;  %v3736_v29 = vadd.f32 %v3735_v13, %v3734_v36  ;;  %v5089_v31 = vadd.f32 %v3733_v58, %v1940_v33 }
 0x189   : > { %v3625_v2 = vpop.f32.mrb[68].mxu0  ;;  %v5093_v41 = vadd.f32 %v3736_v29, %v1943_v53 }
 0x18a   : > { %v3626_v38 = vpop.f32.mrb[69].mxu0 }
 0x18b   : > { %v3627_v44 = vadd.f32 %v3626_v38, %v3625_v2  ;;  %v3628_v28 = vpop.f32.mrb[70].mxu0  ;;  %v3737_v49 = vpop.f32.mrb[68].mxu1  ;;  %v2502_v2 = vld [vmem:[%s5680_s5 + $0x40] sm:$0xff]  ;;  %v2503_v38 = vld [vmem:[%s5680_s5 + $0x48] sm:$0xff] }
 0x18c   : > { %v3629_v52 = vpop.f32.mrb[71].mxu0  ;;  %v3738_v23 = vpop.f32.mrb[69].mxu1 }
 0x18d   : > { %v1948_v57 = vadd.f32 %v3627_v44, %v4911_v21  ;;  %v3630_v60 = vadd.f32 %v3629_v52, %v3628_v28  ;;  %v3739_v34 = vadd.f32 %v3738_v23, %v3737_v49  ;;  %v3740_v26 = vpop.f32.mrb[70].mxu1  ;;  %v5111_v49 = vpack.c.bf16 %v2503_v38, %v2502_v2 }
 0x18e   : > { %v3741_v9 = vpop.f32.mrb[71].mxu1 }
 0x18f   : > { %v1951_v45 = vadd.f32 %v3630_v60, %v4914_v32  ;;  %v3742_v17 = vadd.f32 %v3741_v9, %v3740_v26  ;;  %v5097_v20 = vadd.f32 %v3739_v34, %v1948_v57  ;;  %4049 = vmatpush3.bf16.msra.mxu1 %v5111_v49 }
 0x190   : > { %4050 = vmatprep.subr.bf16.mxu1 %v4278_v62 }
 0x191   : > { %v3631_v22 = vpop.f32.mrb[72].mxu0  ;;  %v5099_v33 = vadd.f32 %v3742_v17, %v1951_v45 }
 0x192   : > { %v3632_v30 = vpop.f32.mrb[73].mxu0 }
 0x193   : > { %v3633_v35 = vadd.f32 %v3632_v30, %v3631_v22  ;;  %v3634_v59 = vpop.f32.mrb[74].mxu0  ;;  %v3743_v8 = vpop.f32.mrb[72].mxu1 }
 0x194   : > { %v3635_v43 = vpop.f32.mrb[75].mxu0  ;;  %v3744_v36 = vpop.f32.mrb[73].mxu1 }
 0x195   : > { %v1956_v21 = vadd.f32 %v3633_v35, %v4923_v12  ;;  %v3636_v58 = vadd.f32 %v3635_v43, %v3634_v59  ;;  %v3745_v53 = vadd.f32 %v3744_v36, %v3743_v8  ;;  %v3746_v13 = vpop.f32.mrb[74].mxu1 }
 0x196   : > { %v3747_v29 = vpop.f32.mrb[75].mxu1 }
 0x197   : > { %v1959_v32 = vadd.f32 %v3636_v58, %v4928_v61  ;;  %v3748_v44 = vadd.f32 %v3747_v29, %v3746_v13  ;;  %v5109_v28 = vadd.f32 %v3745_v53, %v1956_v21 }
 0x199   : > { %v3637_v12 = vpop.f32.mrb[76].mxu0  ;;  %v5113_v57 = vadd.f32 %v3748_v44, %v1959_v32 }
 0x19a   : > { %v3638_v52 = vpop.f32.mrb[77].mxu0 }
 0x19b   : > { %v3639_v61 = vadd.f32 %v3638_v52, %v3637_v12  ;;  %v3640_v60 = vpop.f32.mrb[78].mxu0  ;;  %v3749_v23 = vpop.f32.mrb[76].mxu1  ;;  %v2504_v52 = vld [vmem:[%s5680_s5 + $0x50] sm:$0xff] }
 0x19c   : > { %v3641_v34 = vpop.f32.mrb[79].mxu0  ;;  %v3750_v9 = vpop.f32.mrb[77].mxu1 }
 0x19d   : > { %v1964_v26 = vadd.f32 %v3639_v61, %v4938_v46  ;;  %v3642_v45 = vadd.f32 %v3641_v34, %v3640_v60  ;;  %v3751_v17 = vadd.f32 %v3750_v9, %v3749_v23  ;;  %v3752_v22 = vpop.f32.mrb[78].mxu1  ;;  %v2505_v61 = vld [vmem:[%s5680_s5 + $0x58] sm:$0xff] }
 0x19e   : > { %v3753_v35 = vpop.f32.mrb[79].mxu1  ;;  %v5133_v34 = vpack.c.bf16 %v2505_v61, %v2504_v52 }
 0x19f   : > { %v1967_v30 = vadd.f32 %v3642_v45, %v4943_v19  ;;  %v3754_v59 = vadd.f32 %v3753_v35, %v3752_v22  ;;  %v5119_v8 = vadd.f32 %v3751_v17, %v1964_v26 }
 0x1a0   : > { %4052 = vmatpush3.bf16.msra.mxu1 %v5133_v34 }
 0x1a1   : > { %v3643_v43 = vpop.f32.mrb[80].mxu0  ;;  %v5121_v58 = vadd.f32 %v3754_v59, %v1967_v30  ;;  %4053 = vmatprep.subr.bf16.mxu1 %v4278_v62 }
 0x1a2   : > { %v3644_v21 = vpop.f32.mrb[81].mxu0 }
 0x1a3   : > { %v3645_v36 = vadd.f32 %v3644_v21, %v3643_v43  ;;  %v3646_v53 = vpop.f32.mrb[82].mxu0  ;;  %v3755_v13 = vpop.f32.mrb[80].mxu1 }
 0x1a4   : > { %v3647_v32 = vpop.f32.mrb[83].mxu0  ;;  %v3756_v2 = vpop.f32.mrb[81].mxu1 }
 0x1a5   : > { %v1972_v46 = vadd.f32 %v3645_v36, %v4951_v42  ;;  %v3648_v29 = vadd.f32 %v3647_v32, %v3646_v53  ;;  %v3757_v38 = vadd.f32 %v3756_v2, %v3755_v13  ;;  %v3758_v44 = vpop.f32.mrb[82].mxu1 }
 0x1a6   : > { %v3759_v12 = vpop.f32.mrb[83].mxu1 }
 0x1a7   : > { %v1975_v19 = vadd.f32 %v3648_v29, %v4955_v55  ;;  %v3760_v60 = vadd.f32 %v3759_v12, %v3758_v44  ;;  %v5131_v23 = vadd.f32 %v3757_v38, %v1972_v46 }
 0x1a9   : > { %v3649_v42 = vpop.f32.mrb[84].mxu0  ;;  %v5135_v45 = vadd.f32 %v3760_v60, %v1975_v19 }
 0x1aa   : > { %v3650_v26 = vpop.f32.mrb[85].mxu0 }
 0x1ab   : > { %v3651_v55 = vadd.f32 %v3650_v26, %v3649_v42  ;;  %v3652_v9 = vpop.f32.mrb[86].mxu0  ;;  %v3761_v17 = vpop.f32.mrb[84].mxu1 }
 0x1ac   : > { %v3653_v22 = vpop.f32.mrb[87].mxu0  ;;  %v3762_v59 = vpop.f32.mrb[85].mxu1 }
 0x1ad   : > { %v1980_v30 = vadd.f32 %v3651_v55, %v4961_v25  ;;  %v3654_v35 = vadd.f32 %v3653_v22, %v3652_v9  ;;  %v3763_v43 = vadd.f32 %v3762_v59, %v3761_v17  ;;  %v3764_v21 = vpop.f32.mrb[86].mxu1  ;;  %v2506_v55 = vld [vmem:[%s5680_s5 + $0x60] sm:$0xff]  ;;  %v2507_v9 = vld [vmem:[%s5680_s5 + $0x68] sm:$0xff] }
 0x1ae   : > { %v3765_v53 = vpop.f32.mrb[87].mxu1 }
 0x1af   : > { %v1983_v36 = vadd.f32 %v3654_v35, %v4965_v56  ;;  %v3766_v13 = vadd.f32 %v3765_v53, %v3764_v21  ;;  %v5141_v32 = vadd.f32 %v3763_v43, %v1980_v30  ;;  %v5155_v30 = vpack.c.bf16 %v2507_v9, %v2506_v55 }
 0x1b1   : > { %v3655_v46 = vpop.f32.mrb[88].mxu0  ;;  %v5143_v2 = vadd.f32 %v3766_v13, %v1983_v36  ;;  %4055 = vmatpush3.bf16.msra.mxu1 %v5155_v30 }
 0x1b2   : > { %v3656_v29 = vpop.f32.mrb[89].mxu0  ;;  %4056 = vmatprep.subr.bf16.mxu1 %v4278_v62 }
 0x1b3   : > { %v3657_v38 = vadd.f32 %v3656_v29, %v3655_v46  ;;  %v3658_v44 = vpop.f32.mrb[90].mxu0  ;;  %v3767_v19 = vpop.f32.mrb[88].mxu1 }
 0x1b4   : > { %v3659_v12 = vpop.f32.mrb[91].mxu0  ;;  %v3768_v61 = vpop.f32.mrb[89].mxu1 }
 0x1b5   : > { %v1988_v25 = vadd.f32 %v3657_v38, %v4971_v63  ;;  %v3660_v52 = vadd.f32 %v3659_v12, %v3658_v44  ;;  %v3769_v60 = vadd.f32 %v3768_v61, %v3767_v19  ;;  %v3770_v42 = vpop.f32.mrb[90].mxu1 }
 0x1b6   : > { %v3771_v26 = vpop.f32.mrb[91].mxu1 }
 0x1b7   : > { %v1991_v56 = vadd.f32 %v3660_v52, %v4975_v18  ;;  %v3772_v17 = vadd.f32 %v3771_v26, %v3770_v42  ;;  %v5153_v22 = vadd.f32 %v3769_v60, %v1988_v25 }
 0x1b9   : > { %v3661_v63 = vpop.f32.mrb[92].mxu0  ;;  %v5157_v59 = vadd.f32 %v3772_v17, %v1991_v56 }
 0x1ba   : > { %v3662_v35 = vpop.f32.mrb[93].mxu0 }
 0x1bb   : > { %v3663_v18 = vadd.f32 %v3662_v35, %v3661_v63  ;;  %v3664_v43 = vpop.f32.mrb[94].mxu0  ;;  %v3773_v21 = vpop.f32.mrb[92].mxu1 }
 0x1bc   : > { %v3665_v36 = vpop.f32.mrb[95].mxu0  ;;  %v3774_v46 = vpop.f32.mrb[93].mxu1 }
 0x1bd   : > { %v1996_v53 = vadd.f32 %v3663_v18, %v4981_v24  ;;  %v3666_v13 = vadd.f32 %v3665_v36, %v3664_v43  ;;  %v3775_v29 = vadd.f32 %v3774_v46, %v3773_v21  ;;  %v3776_v38 = vpop.f32.mrb[94].mxu1 }
 0x1be   : > { %v3777_v19 = vpop.f32.mrb[95].mxu1 }
 0x1bf   : > { %v1999_v44 = vadd.f32 %v3666_v13, %v4985_v51  ;;  %v3778_v12 = vadd.f32 %v3777_v19, %v3776_v38  ;;  %v5163_v25 = vadd.f32 %v3775_v29, %v1996_v53  ;;  %v2509_v38 = vld [vmem:[%s5680_s5 + $0x78] sm:$0xff] }
 0x1c1   : > { %v3667_v52 = vpop.f32.mrb[96].mxu0  ;;  %v5165_v60 = vadd.f32 %v3778_v12, %v1999_v44  ;;  %v4280_v12 = vmov 0.0  }
 0x1c2   : > { %v3668_v61 = vpop.f32.mrb[97].mxu0  ;;  %3975 = vmatprep.mubr.msk.f32.mxu1 %vm4279_vm0, %v4280_v12 }
 0x1c3   : > { %v3669_v42 = vadd.f32 %v3668_v61, %v3667_v52  ;;  %v3670_v56 = vpop.f32.mrb[98].mxu0  ;;  %v3779_v26 = vpop.f32.mrb[96].mxu1 }
 0x1c4   : > { %v3671_v55 = vpop.f32.mrb[99].mxu0  ;;  %v3780_v17 = vpop.f32.mrb[97].mxu1 }
 0x1c5   : > { %v2004_v24 = vadd.f32 %v3669_v42, %v4991_v7  ;;  %v3672_v9 = vadd.f32 %v3671_v55, %v3670_v56  ;;  %v3781_v63 = vadd.f32 %v3780_v17, %v3779_v26  ;;  %v3782_v35 = vpop.f32.mrb[98].mxu1  ;;  %v2508_v7 = vld [vmem:[%s5680_s5 + $0x70] sm:$0xff] }
 0x1c6   : > { %v3783_v18 = vpop.f32.mrb[99].mxu1  ;;  %v5179_v19 = vpack.c.bf16 %v2509_v38, %v2508_v7 }
 0x1c7   : > { %v2007_v51 = vadd.f32 %v3672_v9, %v4995_v54  ;;  %v3784_v43 = vadd.f32 %v3783_v18, %v3782_v35  ;;  %v5169_v21 = vadd.f32 %v3781_v63, %v2004_v24 }
 0x1c8   : > { %4058 = vmatpush3.bf16.msra.mxu1 %v5179_v19 }
 0x1c9   : > { %v3673_v36 = vpop.f32.mrb[100].mxu0  ;;  %v5171_v13 = vadd.f32 %v3784_v43, %v2007_v51  ;;  %4059 = vmatprep.subr.bf16.mxu1 %v4278_v62 }
 0x1ca   : > { %v3674_v53 = vpop.f32.mrb[101].mxu0 }
 0x1cb   : > { %v3675_v46 = vadd.f32 %v3674_v53, %v3673_v36  ;;  %v3676_v29 = vpop.f32.mrb[102].mxu0  ;;  %v3785_v44 = vpop.f32.mrb[100].mxu1 }
 0x1cc   : > { %v3677_v54 = vpop.f32.mrb[103].mxu0  ;;  %v3786_v42 = vpop.f32.mrb[101].mxu1 }
 0x1cd   : > { %v2012_v52 = vadd.f32 %v3675_v46, %v5001_v3  ;;  %v3678_v61 = vadd.f32 %v3677_v54, %v3676_v29  ;;  %v3787_v56 = vadd.f32 %v3786_v42, %v3785_v44  ;;  %v3788_v26 = vpop.f32.mrb[102].mxu1 }
 0x1ce   : > { %v3789_v24 = vpop.f32.mrb[103].mxu1 }
 0x1cf   : > { %v2015_v55 = vadd.f32 %v3678_v61, %v5005_v27  ;;  %v3790_v9 = vadd.f32 %v3789_v24, %v3788_v26  ;;  %v5187_v17 = vadd.f32 %v3787_v56, %v2012_v52 }
 0x1d1   : > { %v3679_v63 = vpop.f32.mrb[104].mxu0  ;;  %v5189_v51 = vadd.f32 %v3790_v9, %v2015_v55 }
 0x1d2   : > { %v3680_v35 = vpop.f32.mrb[105].mxu0 }
 0x1d3   : > { %v3681_v18 = vadd.f32 %v3680_v35, %v3679_v63  ;;  %v3682_v3 = vpop.f32.mrb[106].mxu0  ;;  %v3791_v43 = vpop.f32.mrb[104].mxu1 }
 0x1d4   : > { %v3683_v36 = vpop.f32.mrb[107].mxu0  ;;  %v3792_v29 = vpop.f32.mrb[105].mxu1 }
 0x1d5   : > { %v2020_v53 = vadd.f32 %v3681_v18, %v5020_v47  ;;  %v3684_v46 = vadd.f32 %v3683_v36, %v3682_v3  ;;  %v3793_v7 = vadd.f32 %v3792_v29, %v3791_v43  ;;  %v3794_v27 = vpop.f32.mrb[106].mxu1 }
 0x1d6   : > { %v3795_v44 = vpop.f32.mrb[107].mxu1 }
 0x1d7   : > { %v2023_v38 = vadd.f32 %v3684_v46, %v5024_v14  ;;  %v3796_v54 = vadd.f32 %v3795_v44, %v3794_v27  ;;  %v5193_v52 = vadd.f32 %v3793_v7, %v2020_v53 }
 0x1d9   : > { %v3685_v61 = vpop.f32.mrb[108].mxu0  ;;  %v5195_v56 = vadd.f32 %v3796_v54, %v2023_v38 }
 0x1da   : > { %v3686_v42 = vpop.f32.mrb[109].mxu0 }
 0x1db   : > { %v3687_v26 = vadd.f32 %v3686_v42, %v3685_v61  ;;  %v3688_v55 = vpop.f32.mrb[110].mxu0  ;;  %v3797_v24 = vpop.f32.mrb[108].mxu1 }
 0x1dc   : > { %v3689_v9 = vpop.f32.mrb[111].mxu0  ;;  %v3798_v35 = vpop.f32.mrb[109].mxu1 }
 0x1dd   : > { %v2028_v47 = vadd.f32 %v3687_v26, %v5031_v11  ;;  %v3690_v63 = vadd.f32 %v3689_v9, %v3688_v55  ;;  %v3799_v18 = vadd.f32 %v3798_v35, %v3797_v24  ;;  %v3800_v3 = vpop.f32.mrb[110].mxu1 }
 0x1de   : > { %v3801_v43 = vpop.f32.mrb[111].mxu1 }
 0x1df   : > { %v2031_v14 = vadd.f32 %v3690_v63, %v5033_v50  ;;  %v3802_v36 = vadd.f32 %v3801_v43, %v3800_v3  ;;  %v5199_v53 = vadd.f32 %v3799_v18, %v2028_v47 }
 0x1e1   : > { %v3691_v46 = vpop.f32.mrb[112].mxu0  ;;  %v5201_v7 = vadd.f32 %v3802_v36, %v2031_v14 }
 0x1e2   : > { %v3692_v29 = vpop.f32.mrb[113].mxu0 }
 0x1e3   : > { %v3693_v27 = vadd.f32 %v3692_v29, %v3691_v46  ;;  %v3694_v38 = vpop.f32.mrb[114].mxu0  ;;  %v3803_v44 = vpop.f32.mrb[112].mxu1 }
 0x1e4   : > { %v3695_v54 = vpop.f32.mrb[115].mxu0  ;;  %v3804_v42 = vpop.f32.mrb[113].mxu1 }
 0x1e5   : > { %v2036_v11 = vadd.f32 %v3693_v27, %v5045_v39  ;;  %v3696_v61 = vadd.f32 %v3695_v54, %v3694_v38  ;;  %v3805_v26 = vadd.f32 %v3804_v42, %v3803_v44  ;;  %v3806_v55 = vpop.f32.mrb[114].mxu1 }
 0x1e6   : > { %v3807_v24 = vpop.f32.mrb[115].mxu1 }
 0x1e7   : > { %v2039_v50 = vadd.f32 %v3696_v61, %v5049_v4  ;;  %v3808_v9 = vadd.f32 %v3807_v24, %v3806_v55  ;;  %v5205_v47 = vadd.f32 %v3805_v26, %v2036_v11 }
 0x1e9   : > { %v3697_v63 = vpop.f32.mrb[116].mxu0  ;;  %v5207_v18 = vadd.f32 %v3808_v9, %v2039_v50 }
 0x1ea   : > { %v3698_v35 = vpop.f32.mrb[117].mxu0 }
 0x1eb   : > { %v3699_v3 = vadd.f32 %v3698_v35, %v3697_v63  ;;  %v3700_v14 = vpop.f32.mrb[118].mxu0  ;;  %v3809_v43 = vpop.f32.mrb[116].mxu1 }
 0x1ec   : > { %v3701_v36 = vpop.f32.mrb[119].mxu0  ;;  %v3810_v29 = vpop.f32.mrb[117].mxu1 }
 0x1ed   : > { %v2044_v39 = vadd.f32 %v3699_v3, %v5053_v1  ;;  %v3702_v46 = vadd.f32 %v3701_v36, %v3700_v14  ;;  %v3811_v27 = vadd.f32 %v3810_v29, %v3809_v43  ;;  %v3812_v38 = vpop.f32.mrb[118].mxu1 }
 0x1ee   : > { %v3813_v44 = vpop.f32.mrb[119].mxu1 }
 0x1ef   : > { %v2047_v4 = vadd.f32 %v3702_v46, %v5055_v16  ;;  %v3814_v54 = vadd.f32 %v3813_v44, %v3812_v38  ;;  %v5211_v11 = vadd.f32 %v3811_v27, %v2044_v39 }
 0x1f1   : > { %v3703_v61 = vpop.f32.mrb[120].mxu0  ;;  %v5213_v26 = vadd.f32 %v3814_v54, %v2047_v4 }
 0x1f2   : > { %v3704_v42 = vpop.f32.mrb[121].mxu0 }
 0x1f3   : > { %v3705_v55 = vadd.f32 %v3704_v42, %v3703_v61  ;;  %v3706_v50 = vpop.f32.mrb[122].mxu0  ;;  %v3815_v24 = vpop.f32.mrb[120].mxu1 }
 0x1f4   : > { %v3707_v9 = vpop.f32.mrb[123].mxu0  ;;  %v3816_v35 = vpop.f32.mrb[121].mxu1 }
 0x1f5   : > { %v2052_v1 = vadd.f32 %v3705_v55, %v5067_v37  ;;  %v3708_v63 = vadd.f32 %v3707_v9, %v3706_v50  ;;  %v3817_v3 = vadd.f32 %v3816_v35, %v3815_v24  ;;  %v3818_v14 = vpop.f32.mrb[122].mxu1 }
 0x1f6   : > { %v3819_v43 = vpop.f32.mrb[123].mxu1 }
 0x1f7   : > { %v2055_v16 = vadd.f32 %v3708_v63, %v5071_v6  ;;  %v3820_v36 = vadd.f32 %v3819_v43, %v3818_v14  ;;  %v5217_v39 = vadd.f32 %v3817_v3, %v2052_v1 }
 0x1f9   : > { %v3709_v46 = vpop.f32.mrb[124].mxu0  ;;  %v5219_v27 = vadd.f32 %v3820_v36, %v2055_v16 }
 0x1fa   : > { %v3710_v29 = vpop.f32.mrb[125].mxu0 }
 0x1fb   : > { %v3711_v38 = vadd.f32 %v3710_v29, %v3709_v46  ;;  %v3712_v4 = vpop.f32.mrb[126].mxu0  ;;  %v3821_v44 = vpop.f32.mrb[124].mxu1 }
 0x1fc   : > { %v3713_v54 = vpop.f32.mrb[127].mxu0  ;;  %v3822_v42 = vpop.f32.mrb[125].mxu1 }
 0x1fd   : > { %v2060_v37 = vadd.f32 %v3711_v38, %v5075_v10  ;;  %v3714_v61 = vadd.f32 %v3713_v54, %v3712_v4  ;;  %v3823_v55 = vadd.f32 %v3822_v42, %v3821_v44  ;;  %v3824_v50 = vpop.f32.mrb[126].mxu1 }
 0x1fe   : > { %v3825_v24 = vpop.f32.mrb[127].mxu1 }
 0x1ff   : > { %v2063_v6 = vadd.f32 %v3714_v61, %v5077_v5  ;;  %v3826_v9 = vadd.f32 %v3825_v24, %v3824_v50  ;;  %v5223_v1 = vadd.f32 %v3823_v55, %v2060_v37 }
 0x201   : > { %v3913_v63 = vpop.f32.mrb[128].mxu0  ;;  %v5228_v14 = vadd.f32 %v3826_v9, %v2063_v6 }
 0x202   : > { %v5226_v35 = vadd.f32 %v3913_v63, %v5097_v20  ;;  %v2261_v3 = vpop.f32.mrb[129].mxu0 }
 0x203   : > { %v5231_v16 = vadd.f32 %v2261_v3, %v5089_v31  ;;  %v3914_v10 = vpop.f32.mrb[130].mxu0 }
 0x204   : > { %v5234_v43 = vadd.f32 %v3914_v10, %v5099_v33  ;;  %v2264_v36 = vpop.f32.mrb[131].mxu0 }
 0x205   : > { %v5237_v5 = vadd.f32 %v2264_v36, %v5093_v41 }
 0x207   : > { %v2388_v46 = vadd.f32 %v5237_v5, %v5231_v16 }
 0x209   : > { %v2389_v20 = vadd.f32 %v2388_v46, %v5226_v35  ;;  %v3917_v29 = vpop.f32.mrb[132].mxu0 }
 0x20a   : > { %v5243_v38 = vadd.f32 %v3917_v29, %v5119_v8  ;;  %v2277_v4 = vpop.f32.mrb[133].mxu0 }
 0x20b   : > { %v5246_v31 = vadd.f32 %v2277_v4, %v5109_v28  ;;  %v2390_v33 = vadd.f32 %v2389_v20, %v5234_v43  ;;  %v3918_v44 = vpop.f32.mrb[134].mxu0 }
 0x20c   : > { %v5250_v54 = vadd.f32 %v3918_v44, %v5121_v58  ;;  %v2280_v41 = vpop.f32.mrb[135].mxu0 }
 0x20d   : > { %v2391_v37 = vadd.f32 %v2390_v33, %v5246_v31  ;;  %v5254_v61 = vadd.f32 %v2280_v41, %v5113_v57 }
 0x20f   : > { %v2392_v42 = vadd.f32 %v2391_v37, %v5254_v61 }
 0x211   : > { %v2393_v8 = vadd.f32 %v2392_v42, %v5243_v38  ;;  %v3921_v55 = vpop.f32.mrb[136].mxu0 }
 0x212   : > { %v5259_v28 = vadd.f32 %v3921_v55, %v5141_v32  ;;  %v2293_v50 = vpop.f32.mrb[137].mxu0 }
 0x213   : > { %v5262_v6 = vadd.f32 %v2293_v50, %v5131_v23  ;;  %v2394_v58 = vadd.f32 %v2393_v8, %v5250_v54  ;;  %v3922_v24 = vpop.f32.mrb[138].mxu0 }
 0x214   : > { %v5266_v9 = vadd.f32 %v3922_v24, %v5143_v2  ;;  %v2296_v57 = vpop.f32.mrb[139].mxu0 }
 0x215   : > { %v2395_v63 = vadd.f32 %v2394_v58, %v5262_v6  ;;  %v5270_v3 = vadd.f32 %v2296_v57, %v5135_v45 }
 0x217   : > { %v2396_v10 = vadd.f32 %v2395_v63, %v5270_v3 }
 0x219   : > { %v2397_v32 = vadd.f32 %v2396_v10, %v5259_v28  ;;  %v3925_v36 = vpop.f32.mrb[140].mxu0 }
 0x21a   : > { %v5275_v23 = vadd.f32 %v3925_v36, %v5163_v25  ;;  %v2309_v46 = vpop.f32.mrb[141].mxu0 }
 0x21b   : > { %v5278_v20 = vadd.f32 %v2309_v46, %v5153_v22  ;;  %v2398_v2 = vadd.f32 %v2397_v32, %v5266_v9  ;;  %v3926_v29 = vpop.f32.mrb[142].mxu0 }
 0x21c   : > { %v5282_v4 = vadd.f32 %v3926_v29, %v5165_v60  ;;  %v2312_v45 = vpop.f32.mrb[143].mxu0 }
 0x21d   : > { %v2399_v33 = vadd.f32 %v2398_v2, %v5278_v20  ;;  %v5286_v44 = vadd.f32 %v2312_v45, %v5157_v59 }
 0x21f   : > { %v2400_v41 = vadd.f32 %v2399_v33, %v5286_v44 }
 0x221   : > { %v2401_v25 = vadd.f32 %v2400_v41, %v5275_v23  ;;  %v3929_v37 = vpop.f32.mrb[144].mxu0 }
 0x222   : > { %v5291_v22 = vadd.f32 %v3929_v37, %v5187_v17  ;;  %v2325_v42 = vpop.f32.mrb[145].mxu0 }
 0x223   : > { %v5294_v8 = vadd.f32 %v2325_v42, %v5169_v21  ;;  %v2402_v60 = vadd.f32 %v2401_v25, %v5282_v4  ;;  %v3930_v55 = vpop.f32.mrb[146].mxu0 }
 0x224   : > { %v5298_v50 = vadd.f32 %v3930_v55, %v5189_v51  ;;  %v2328_v59 = vpop.f32.mrb[147].mxu0 }
 0x225   : > { %v2403_v58 = vadd.f32 %v2402_v60, %v5294_v8  ;;  %v5302_v24 = vadd.f32 %v2328_v59, %v5171_v13 }
 0x227   : > { %v2404_v57 = vadd.f32 %v2403_v58, %v5302_v24 }
 0x229   : > { %v2405_v17 = vadd.f32 %v2404_v57, %v5291_v22  ;;  %v3933_v63 = vpop.f32.mrb[148].mxu0 }
 0x22a   : > { %v5307_v21 = vadd.f32 %v3933_v63, %v5199_v53  ;;  %v2341_v10 = vpop.f32.mrb[149].mxu0 }
 0x22b   : > { %v5310_v32 = vadd.f32 %v2341_v10, %v5193_v52  ;;  %v2406_v51 = vadd.f32 %v2405_v17, %v5298_v50  ;;  %v3934_v36 = vpop.f32.mrb[150].mxu0 }
 0x22c   : > { %v5314_v46 = vadd.f32 %v3934_v36, %v5201_v7  ;;  %v2344_v13 = vpop.f32.mrb[151].mxu0 }
 0x22d   : > { %v2407_v2 = vadd.f32 %v2406_v51, %v5310_v32  ;;  %v5318_v29 = vadd.f32 %v2344_v13, %v5195_v56 }
 0x22f   : > { %v2408_v45 = vadd.f32 %v2407_v2, %v5318_v29 }
 0x231   : > { %v2409_v53 = vadd.f32 %v2408_v45, %v5307_v21  ;;  %v3937_v33 = vpop.f32.mrb[152].mxu0 }
 0x232   : > { %v5323_v52 = vadd.f32 %v3937_v33, %v5211_v11  ;;  %v2357_v41 = vpop.f32.mrb[153].mxu0 }
 0x233   : > { %v5326_v25 = vadd.f32 %v2357_v41, %v5205_v47  ;;  %v2410_v7 = vadd.f32 %v2409_v53, %v5314_v46  ;;  %v3938_v37 = vpop.f32.mrb[154].mxu0  ;;  %v2581_v41 = vld [vmem:[%s5681_s6 + $0x8] sm:$0xff] }
 0x234   : > { %v5330_v42 = vadd.f32 %v3938_v37, %v5213_v26  ;;  %v2360_v56 = vpop.f32.mrb[155].mxu0 }
 0x235   : > { %v2411_v60 = vadd.f32 %v2410_v7, %v5326_v25  ;;  %v5334_v55 = vadd.f32 %v2360_v56, %v5207_v18  ;;  %v2582_v56 = vld [vmem:[%s5681_s6 + $0x10] sm:$0xff] }
 0x237   : > { %v2412_v59 = vadd.f32 %v2411_v60, %v5334_v55  ;;  %v2583_v60 = vld [vmem:[%s5681_s6 + $0x18] sm:$0xff] }
 0x239   : > { %v2413_v11 = vadd.f32 %v2412_v59, %v5323_v52  ;;  %v3941_v58 = vpop.f32.mrb[156].mxu0  ;;  %v5370_v59 = vpack.c.bf16 %v2583_v60, %v2582_v56  ;;  %v2435_v60 = vmul.f32 %v5259_v28, %v5259_v28 }
 0x23a   : > { %v5339_v47 = vadd.f32 %v3941_v58, %v5223_v1  ;;  %v2373_v57 = vpop.f32.mrb[157].mxu0  ;;  %v2425_v58 = vmul.f32 %v5231_v16, %v5231_v16 }
 0x23b   : > { %v5342_v17 = vadd.f32 %v2373_v57, %v5217_v39  ;;  %v2414_v26 = vadd.f32 %v2413_v11, %v5330_v42  ;;  %v3942_v63 = vpop.f32.mrb[158].mxu0  ;;  %v2426_v11 = vmul.f32 %v5237_v5, %v5237_v5 }
 0x23c   : > { %v5346_v10 = vadd.f32 %v3942_v63, %v5228_v14  ;;  %v2376_v18 = vpop.f32.mrb[159].mxu0  ;;  %v2580_v14 = vld [vmem:[%s5681_s6] sm:$0xff] }
 0x23d   : > { %v2415_v51 = vadd.f32 %v2414_v26, %v5342_v17  ;;  %v5350_v36 = vadd.f32 %v2376_v18, %v5219_v27  ;;  %v5361_v7 = vpack.c.bf16 %v2581_v41, %v2580_v14  ;;  %v2457_v57 = vadd.f32 %v2426_v11, %v2425_v58 }
 0x23e   : > { %v2427_v26 = vmul.f32 %v5226_v35, %v5226_v35  ;;  %v2428_v18 = vmul.f32 %v5234_v43, %v5234_v43  ;;  %v2433_v14 = vmul.f32 %v5262_v6, %v5262_v6  ;;  %v2436_v58 = vmul.f32 %v5266_v9, %v5266_v9 }
 0x23f   : > { %v2416_v13 = vadd.f32 %v2415_v51, %v5350_v36  ;;  %v2429_v51 = vmul.f32 %v5246_v31, %v5246_v31 }
 0x240   : > { %v2458_v63 = vadd.f32 %v2457_v57, %v2427_v26  ;;  %v2437_v57 = vmul.f32 %v5278_v20, %v5278_v20 }
 0x241   : > { %v2417_v1 = vadd.f32 %v2416_v13, %v5339_v47 }
 0x242   : > { %v2459_v13 = vadd.f32 %v2458_v63, %v2428_v18  ;;  %v2438_v18 = vmul.f32 %v5286_v44, %v5286_v44 }
 0x243   : > { %v2418_v2 = vadd.f32 %v2417_v1, %v5346_v10 }
 0x244   : > { %v2460_v1 = vadd.f32 %v2459_v13, %v2429_v51  ;;  %v2439_v13 = vmul.f32 %v5275_v23, %v5275_v23 }
 0x245   : > { %v2419_v39 = vrot.slane %v2418_v2, 4 }
 0x247   : > { %v2420_v45 = vadd.f32 %v2419_v39, %v2418_v2  ;;  %v2430_v2 = vmul.f32 %v5254_v61, %v5254_v61 }
 0x249   : > { %v2421_v53 = vrot.slane %v2420_v45, 2  ;;  %v2461_v39 = vadd.f32 %v2460_v1, %v2430_v2  ;;  %v2440_v2 = vmul.f32 %v5282_v4, %v5282_v4 }
 0x24b   : > { %v2422_v33 = vadd.f32 %v2421_v53, %v2420_v45  ;;  %v2431_v45 = vmul.f32 %v5243_v38, %v5243_v38 }
 0x24d   : > { %v2423_v27 = vrot.slane %v2422_v33, 1  ;;  %v2462_v53 = vadd.f32 %v2461_v39, %v2431_v45  ;;  %v2441_v39 = vmul.f32 %v5294_v8, %v5294_v8 }
 0x24f   : > { %v2424_v37 = vadd.f32 %v2423_v27, %v2422_v33  ;;  %v2432_v33 = vmul.f32 %v5250_v54, %v5250_v54 }
 0x251   : > { %3976 = vmatmul.mubr.f32.vlgmr.msra.gmra.mrb[128].mxu1 %v2424_v37  ;;  %v2463_v41 = vadd.f32 %v2462_v53, %v2432_v33  ;;  %v2434_v37 = vmul.f32 %v5270_v3, %v5270_v3  ;;  %v2442_v33 = vmul.f32 %v5302_v24, %v5302_v24 }
 0x252   : > { %4061 = vmatpush3.bf16.msra.mxu1 %v5361_v7  ;;  %3986 = vmatprep.mubr.msk.f32.mxu1 %vm4279_vm0, %v4280_v12 }
 0x253   : > { %4062 = vmatprep.subr.bf16.mxu1 %v4278_v62  ;;  %v2464_v27 = vadd.f32 %v2463_v41, %v2433_v14  ;;  %v2443_v41 = vmul.f32 %v5291_v22, %v5291_v22 }
 0x255   : > { %v2465_v56 = vadd.f32 %v2464_v27, %v2434_v37  ;;  %v2444_v37 = vmul.f32 %v5298_v50, %v5298_v50 }
 0x256   : > { %4064 = vmatpush3.bf16.msra.mxu1 %v5370_v59 }
 0x257   : > { %4065 = vmatprep.subr.bf16.mxu1 %v4278_v62  ;;  %v2466_v11 = vadd.f32 %v2465_v56, %v2435_v60  ;;  %v2445_v56 = vmul.f32 %v5310_v32, %v5310_v32 }
 0x259   : > { %v2467_v26 = vadd.f32 %v2466_v11, %v2436_v58  ;;  %v2446_v58 = vmul.f32 %v5318_v29, %v5318_v29 }
 0x25b   : > { %v2468_v63 = vadd.f32 %v2467_v26, %v2437_v57  ;;  %v2447_v26 = vmul.f32 %v5307_v21, %v5307_v21 }
 0x25d   : > { %v2469_v51 = vadd.f32 %v2468_v63, %v2438_v18  ;;  %v2448_v18 = vmul.f32 %v5314_v46, %v5314_v46 }
 0x25f   : > { %v2470_v1 = vadd.f32 %v2469_v51, %v2439_v13  ;;  %v2449_v51 = vmul.f32 %v5326_v25, %v5326_v25 }
 0x261   : > { %v2471_v45 = vadd.f32 %v2470_v1, %v2440_v2  ;;  %v2450_v2 = vmul.f32 %v5334_v55, %v5334_v55 }
 0x263   : > { %v2472_v53 = vadd.f32 %v2471_v45, %v2441_v39  ;;  %v2451_v45 = vmul.f32 %v5323_v52, %v5323_v52 }
 0x265   : > { %v2473_v14 = vadd.f32 %v2472_v53, %v2442_v33  ;;  %v2452_v33 = vmul.f32 %v5330_v42, %v5330_v42 }
 0x267   : > { %v2474_v27 = vadd.f32 %v2473_v14, %v2443_v41  ;;  %v2453_v14 = vmul.f32 %v5342_v17, %v5342_v17 }
 0x269   : > { %v2475_v60 = vadd.f32 %v2474_v27, %v2444_v37  ;;  %v2454_v37 = vmul.f32 %v5350_v36, %v5350_v36 }
 0x26b   : > { %v2476_v11 = vadd.f32 %v2475_v60, %v2445_v56 }
 0x26d   : > { %v2477_v57 = vadd.f32 %v2476_v11, %v2446_v58  ;;  %v2455_v11 = vmul.f32 %v5339_v47, %v5339_v47 }
 0x26f   : > { %v2478_v63 = vadd.f32 %v2477_v57, %v2447_v26  ;;  %v2456_v26 = vmul.f32 %v5346_v10, %v5346_v10 }
 0x271   : > { %v2479_v13 = vadd.f32 %v2478_v63, %v2448_v18 }
 0x273   : > { %v2480_v1 = vadd.f32 %v2479_v13, %v2449_v51 }
 0x275   : > { %v2481_v39 = vadd.f32 %v2480_v1, %v2450_v2 }
 0x277   : > { %v2482_v53 = vadd.f32 %v2481_v39, %v2451_v45 }
 0x279   : > { %v2483_v41 = vadd.f32 %v2482_v53, %v2452_v33 }
 0x27b   : > { %v2484_v27 = vadd.f32 %v2483_v41, %v2453_v14 }
 0x27d   : > { %v2485_v56 = vadd.f32 %v2484_v27, %v2454_v37 }
 0x27f   : > { %v2486_v57 = vadd.f32 %v2485_v56, %v2455_v11 }
 0x281   : > { %v2487_v63 = vadd.f32 %v2486_v57, %v2456_v26 }
 0x283   : > { %v2488_v18 = vrot.slane %v2487_v63, 4 }
 0x324   : > { %v2576_v60 = vpop.f32.mrb[128].mxu1 }
 0x325   : > { %v3977_v58 = vpop.f32.mrb[129].mxu1  ;;  %3987 = vmatmul.mubr.msk.f32.vlgmr.msra.gmra.mrb[130].mxu1 %vm2584_vm1, %v2576_v60 }
 0x326   : > { %4067 = vmatpush3.bf16.msra.mxu1 %v5015_v15  ;;  %4021 = vmatprep.mubr.msk.f32.mxu1 %vm4279_vm0, %v4280_v12  ;;  %v2489_v15 = vadd.f32 %v2488_v18, %v2487_v63 }
 0x327   : > { %4068 = vmatprep.subr.bf16.mxu1 %v4278_v62 }
 0x328   : > { %v2490_v51 = vrot.slane %v2489_v15, 2 }
 0x32a   : > { %4070 = vmatpush3.bf16.msra.mxu1 %v5042_v0  ;;  %v2491_v0 = vadd.f32 %v2490_v51, %v2489_v15 }
 0x32b   : > { %4071 = vmatprep.subr.bf16.mxu1 %v4278_v62 }
 0x32e   : > { %4073 = vmatpush3.bf16.msra.mxu1 %v5064_v48  ;;  %v2492_v48 = vrot.slane %v2491_v0, 1 }
 0x32f   : > { %4074 = vmatprep.subr.bf16.mxu1 %v4278_v62 }
 0x332   : > { %4076 = vmatpush3.bf16.msra.mxu1 %v5086_v40  ;;  %v2493_v40 = vadd.f32 %v2492_v48, %v2491_v0 }
 0x333   : > { %4077 = vmatprep.subr.bf16.mxu1 %v4278_v62 }
 0x336   : > { %4079 = vmatpush3.bf16.msra.mxu1 %v5111_v49 }
 0x337   : > { %4080 = vmatprep.subr.bf16.mxu1 %v4278_v62 }
 0x33a   : > { %4082 = vmatpush3.bf16.msra.mxu1 %v5133_v34 }
 0x33b   : > { %4083 = vmatprep.subr.bf16.mxu1 %v4278_v62 }
 0x33e   : > { %4085 = vmatpush3.bf16.msra.mxu1 %v5155_v30 }
 0x33f   : > { %4086 = vmatprep.subr.bf16.mxu1 %v4278_v62 }
 0x342   : > { %4088 = vmatpush3.bf16.msra.mxu1 %v5179_v19  ;;  %v2808_v19 = vlaneseq }
 0x343   : > { %4089 = vmatprep.subr.bf16.mxu1 %v4278_v62 }
 0x344   : > { %v2809_v2 = vshrl.u32 %v2808_v19, 7 }
 0x345   : > { %4022 = vmatmul.mubr.f32.vlgmr.msra.gmra.mrb[132].mxu1 %v2493_v40 }
 0x346   : > { %4091 = vmatpush3.bf16.msra.mxu1 %v5361_v7  ;;  %4032 = vmatprep.mubr.msk.f32.mxu1 %vm4279_vm0, %v4280_v12  ;;  %v2810_v33 = vsub.s32 0, %v2809_v2 }
 0x347   : > { %4092 = vmatprep.subr.bf16.mxu1 %v4278_v62 }
 0x34a   : > { %4094 = vmatpush3.bf16.msra.mxu1 %v5370_v59 }
 0x3f8   : > { %v2654_v49 = vpop.f32.mrb[130].mxu1 }
 0x3f9   : > { %v3988_v34 = vpop.f32.mrb[131].mxu1  ;;  %v2659_v1 = vmul.f32 0.0009765625, %v2654_v49 }
 0x3fb   : > { %v2804_v45 = vmul.f32 %v2659_v1, %v2659_v1  ;;  %v5466_v41 = vrot.slane %v2659_v1, %v2810_v33  ;;  %v3371_v1 = vld [vmem:[%s5678_s3] ss:$0 sm:$0xff] }
 0x3fd   : > { %v2812_v62 = vsub.f32 %v5231_v16, %v5466_v41  ;;  %v2813_v59 = vsub.f32 %v5237_v5, %v5466_v41  ;;  %v2814_v27 = vsub.f32 %v5226_v35, %v5466_v41  ;;  %v2815_v37 = vsub.f32 %v5234_v43, %v5466_v41 }
 0x3fe   : > { %v2816_v56 = vsub.f32 %v5246_v31, %v5466_v41  ;;  %v2817_v60 = vsub.f32 %v5254_v61, %v5466_v41  ;;  %v2818_v11 = vsub.f32 %v5243_v38, %v5466_v41  ;;  %v2819_v16 = vsub.f32 %v5250_v54, %v5466_v41 }
 0x3ff   : > { %v2820_v5 = vsub.f32 %v5262_v6, %v5466_v41  ;;  %v2821_v35 = vsub.f32 %v5270_v3, %v5466_v41  ;;  %v2822_v43 = vsub.f32 %v5259_v28, %v5466_v41  ;;  %v2823_v31 = vsub.f32 %v5266_v9, %v5466_v41 }
 0x400   : > { %v2824_v61 = vsub.f32 %v5278_v20, %v5466_v41  ;;  %v2825_v38 = vsub.f32 %v5286_v44, %v5466_v41  ;;  %v2826_v54 = vsub.f32 %v5275_v23, %v5466_v41  ;;  %v2827_v6 = vsub.f32 %v5282_v4, %v5466_v41 }
 0x401   : > { %v2828_v3 = vsub.f32 %v5294_v8, %v5466_v41  ;;  %v2829_v28 = vsub.f32 %v5302_v24, %v5466_v41  ;;  %v2830_v9 = vsub.f32 %v5291_v22, %v5466_v41  ;;  %v2831_v20 = vsub.f32 %v5298_v50, %v5466_v41 }
 0x402   : > { %v2832_v44 = vsub.f32 %v5310_v32, %v5466_v41  ;;  %v2833_v23 = vsub.f32 %v5318_v29, %v5466_v41  ;;  %v2834_v4 = vsub.f32 %v5307_v21, %v5466_v41  ;;  %v2835_v8 = vsub.f32 %v5314_v46, %v5466_v41 }
 0x403   : > { %v2836_v24 = vsub.f32 %v5326_v25, %v5466_v41  ;;  %v2837_v22 = vsub.f32 %v5334_v55, %v5466_v41  ;;  %v2838_v50 = vsub.f32 %v5323_v52, %v5466_v41  ;;  %v2839_v32 = vsub.f32 %v5330_v42, %v5466_v41 }
 0x404   : > { %v2840_v29 = vsub.f32 %v5342_v17, %v5466_v41  ;;  %v2841_v21 = vsub.f32 %v5350_v36, %v5466_v41  ;;  %v2842_v46 = vsub.f32 %v5339_v47, %v5466_v41  ;;  %v2843_v25 = vsub.f32 %v5346_v10, %v5466_v41 }
 0x418   : > { %v2726_v30 = vpop.f32.mrb[132].mxu1 }
 0x419   : > { %v4023_v13 = vpop.f32.mrb[133].mxu1  ;;  %4033 = vmatmul.mubr.msk.f32.vlgmr.msra.gmra.mrb[134].mxu1 %vm2584_vm1, %v2726_v30 }
 0x4ec   : > { %v2799_v39 = vpop.f32.mrb[134].mxu1 }
 0x4ed   : > { %v2803_v53 = vmul.f32 0.0009765625, %v2799_v39  ;;  %v4034_v7 = vpop.f32.mrb[135].mxu1 }
 0x4ef   : > { %v2805_v14 = vsub.f32 %v2803_v53, %v2804_v45 }
 0x4f1   : > { %v2806_v12 = vadd.f32 1e-05, %v2805_v14 }
 0x4f3   : > { %4212 = vrsqrt.f32 %v2806_v12 }
 0x4fd   : > { %v4213_v58 = vpop.eup %4212 }
 0x4fe   : > { %v2847_v57 = vrot.slane %v4213_v58, %v2810_v33 }
 0x500   : > { %v2848_v55 = vmul.f32 %v2847_v57, %v2812_v62  ;;  %v2849_v26 = vmul.f32 %v2847_v57, %v2813_v59  ;;  %v2850_v63 = vmul.f32 %v2847_v57, %v2814_v27  ;;  %v2851_v52 = vmul.f32 %v2847_v57, %v2815_v37 }
 0x501   : > { %v2852_v18 = vmul.f32 %v2847_v57, %v2816_v56  ;;  %v2853_v15 = vmul.f32 %v2847_v57, %v2817_v60  ;;  %v2854_v42 = vmul.f32 %v2847_v57, %v2818_v11  ;;  %v2855_v51 = vmul.f32 %v2847_v57, %v2819_v16 }
 0x502   : > { %v2856_v0 = vmul.f32 %v2847_v57, %v2820_v5  ;;  %v2857_v48 = vmul.f32 %v2847_v57, %v2821_v35  ;;  %v2858_v17 = vmul.f32 %v2847_v57, %v2822_v43  ;;  %v2859_v40 = vmul.f32 %v2847_v57, %v2823_v31 }
 0x503   : > { %v2860_v49 = vmul.f32 %v2847_v57, %v2824_v61  ;;  %v2861_v36 = vmul.f32 %v2847_v57, %v2825_v38  ;;  %v2862_v34 = vmul.f32 %v2847_v57, %v2826_v54  ;;  %v2863_v30 = vmul.f32 %v2847_v57, %v2827_v6 }
 0x504   : > { %v2864_v47 = vmul.f32 %v2847_v57, %v2828_v3  ;;  %v2865_v13 = vmul.f32 %v2847_v57, %v2829_v28  ;;  %v2866_v19 = vmul.f32 %v2847_v57, %v2830_v9  ;;  %v2867_v10 = vmul.f32 %v2847_v57, %v2831_v20 }
 0x505   : > { %v2868_v2 = vmul.f32 %v2847_v57, %v2832_v44  ;;  %v2869_v39 = vmul.f32 %v2847_v57, %v2833_v23  ;;  %v2870_v45 = vmul.f32 %v2847_v57, %v2834_v4  ;;  %v2871_v53 = vmul.f32 %v2847_v57, %v2835_v8  ;;  %v3372_v4 = vld [vmem:[%s5679_s4] ss:$0 sm:$0xff] }
 0x506   : > { %v2872_v7 = vmul.f32 %v2847_v57, %v2836_v24  ;;  %v2873_v33 = vmul.f32 %v2847_v57, %v2837_v22  ;;  %v2874_v14 = vmul.f32 %v2847_v57, %v2838_v50  ;;  %v2875_v12 = vmul.f32 %v2847_v57, %v2839_v32 }
 0x507   : > { %v2876_v41 = vmul.f32 %v2847_v57, %v2840_v29  ;;  %v2877_v62 = vmul.f32 %v2847_v57, %v2841_v21  ;;  %v2878_v59 = vmul.f32 %v2847_v57, %v2842_v46  ;;  %v2879_v27 = vmul.f32 %v2847_v57, %v2843_v25 }
 0x508   : > { %v2887_v37 = vmul.f32 %v3371_v1, %v2848_v55  ;;  %v2888_v56 = vmul.f32 %v3371_v1, %v2849_v26  ;;  %v2889_v60 = vmul.f32 %v3371_v1, %v2850_v63  ;;  %v2890_v11 = vmul.f32 %v3371_v1, %v2851_v52 }
 0x509   : > { %v2891_v16 = vmul.f32 %v3371_v1, %v2852_v18  ;;  %v2892_v5 = vmul.f32 %v3371_v1, %v2853_v15  ;;  %v2893_v35 = vmul.f32 %v3371_v1, %v2854_v42  ;;  %v2894_v43 = vmul.f32 %v3371_v1, %v2855_v51 }
 0x50a   : > { %v2895_v31 = vmul.f32 %v3371_v1, %v2856_v0  ;;  %v2896_v61 = vmul.f32 %v3371_v1, %v2857_v48  ;;  %v2897_v38 = vmul.f32 %v3371_v1, %v2858_v17  ;;  %v2898_v54 = vmul.f32 %v3371_v1, %v2859_v40 }
 0x50b   : > { %v2899_v6 = vmul.f32 %v3371_v1, %v2860_v49  ;;  %v2900_v3 = vmul.f32 %v3371_v1, %v2861_v36  ;;  %v2901_v28 = vmul.f32 %v3371_v1, %v2862_v34  ;;  %v2902_v9 = vmul.f32 %v3371_v1, %v2863_v30 }
 0x50c   : > { %v2903_v20 = vmul.f32 %v3371_v1, %v2864_v47  ;;  %v2904_v44 = vmul.f32 %v3371_v1, %v2865_v13  ;;  %v2905_v58 = vmul.f32 %v3371_v1, %v2866_v19  ;;  %v2906_v23 = vmul.f32 %v3371_v1, %v2867_v10 }
 0x50d   : > { %v2907_v8 = vmul.f32 %v3371_v1, %v2868_v2  ;;  %v2908_v24 = vmul.f32 %v3371_v1, %v2869_v39  ;;  %v2909_v22 = vmul.f32 %v3371_v1, %v2870_v45  ;;  %v2910_v50 = vmul.f32 %v3371_v1, %v2871_v53 }
 0x50e   : > { %v2911_v32 = vmul.f32 %v3371_v1, %v2872_v7  ;;  %v2912_v57 = vmul.f32 %v3371_v1, %v2873_v33  ;;  %v2913_v29 = vmul.f32 %v3371_v1, %v2874_v14  ;;  %v2914_v21 = vmul.f32 %v3371_v1, %v2875_v12 }
 0x50f   : > { %v2915_v46 = vmul.f32 %v3371_v1, %v2876_v41  ;;  %v2916_v25 = vmul.f32 %v3371_v1, %v2877_v62  ;;  %v2917_v55 = vmul.f32 %v3371_v1, %v2878_v59  ;;  %v2918_v26 = vmul.f32 %v3371_v1, %v2879_v27 }
 0x510   : > { %v2926_v63 = vadd.f32 %v3372_v4, %v2887_v37  ;;  %v2927_v52 = vadd.f32 %v3372_v4, %v2888_v56  ;;  %v2928_v18 = vadd.f32 %v3372_v4, %v2889_v60  ;;  %v2929_v15 = vadd.f32 %v3372_v4, %v2890_v11 }
 0x511   : > { %v2930_v42 = vadd.f32 %v3372_v4, %v2891_v16  ;;  %v2931_v51 = vadd.f32 %v3372_v4, %v2892_v5  ;;  %v2932_v0 = vadd.f32 %v3372_v4, %v2893_v35  ;;  %v2933_v48 = vadd.f32 %v3372_v4, %v2894_v43 }
 0x512   : > { %v2934_v17 = vadd.f32 %v3372_v4, %v2895_v31  ;;  %v2935_v40 = vadd.f32 %v3372_v4, %v2896_v61  ;;  %v2936_v49 = vadd.f32 %v3372_v4, %v2897_v38  ;;  %v2937_v36 = vadd.f32 %v3372_v4, %v2898_v54 }
 0x513   : > { %v2938_v34 = vadd.f32 %v3372_v4, %v2899_v6  ;;  %v2939_v30 = vadd.f32 %v3372_v4, %v2900_v3  ;;  %v2940_v47 = vadd.f32 %v3372_v4, %v2901_v28  ;;  %v2941_v13 = vadd.f32 %v3372_v4, %v2902_v9 }
 0x514   : > { %v5541_v19 = vadd.f32 %v3372_v4, %v2903_v20  ;;  %v5543_v10 = vadd.f32 %v3372_v4, %v2904_v44  ;;  %v5545_v1 = vadd.f32 %v3372_v4, %v2905_v58  ;;  %v5547_v2 = vadd.f32 %v3372_v4, %v2906_v23 }
 0x515   : > { %v5549_v39 = vadd.f32 %v3372_v4, %v2907_v8  ;;  %v5551_v45 = vadd.f32 %v3372_v4, %v2908_v24  ;;  %v5553_v53 = vadd.f32 %v3372_v4, %v2909_v22  ;;  %v5555_v7 = vadd.f32 %v3372_v4, %v2910_v50 }
 0x516   : > { %v5557_v33 = vadd.f32 %v3372_v4, %v2911_v32  ;;  %v5559_v14 = vadd.f32 %v3372_v4, %v2912_v57  ;;  %v5561_v12 = vadd.f32 %v3372_v4, %v2913_v29  ;;  %v5563_v41 = vadd.f32 %v3372_v4, %v2914_v21 }
 0x517   : > { %v5565_v62 = vadd.f32 %v3372_v4, %v2915_v46  ;;  %v5567_v59 = vadd.f32 %v3372_v4, %v2916_v25  ;;  %v5569_v27 = vadd.f32 %v3372_v4, %v2917_v55  ;;  %v5571_v37 = vadd.f32 %v3372_v4, %v2918_v26 }
 0x518   : > { %v2958_v56 = vmax.f32 %v2926_v63, 0.0  ;;  %v2959_v60 = vmax.f32 %v2927_v52, 0.0  ;;  %v2960_v11 = vmax.f32 %v2928_v18, 0.0  ;;  %v2961_v16 = vmax.f32 %v2929_v15, 0.0 }
 0x519   : > { %v2962_v5 = vmax.f32 %v2930_v42, 0.0  ;;  %v2963_v35 = vmax.f32 %v2931_v51, 0.0  ;;  %v2964_v43 = vmax.f32 %v2932_v0, 0.0  ;;  %v2965_v31 = vmax.f32 %v2933_v48, 0.0 }
 0x51a   : > { %v2966_v61 = vmax.f32 %v2934_v17, 0.0  ;;  %v2967_v38 = vmax.f32 %v2935_v40, 0.0  ;;  %v2968_v54 = vmax.f32 %v2936_v49, 0.0  ;;  %v2969_v6 = vmax.f32 %v2937_v36, 0.0  ;;  %2990 = vst [vmem:[%s5573_s21] sm:$0xff] %v2958_v56  ;;  %2991 = vst [vmem:[%s5573_s21 + $0x8] sm:$0xff] %v2959_v60 }
 0x51b   : > { %2992 = vst [vmem:[%s5573_s21 + $0x10] sm:$0xff] %v2960_v11  ;;  %2993 = vst [vmem:[%s5573_s21 + $0x18] sm:$0xff] %v2961_v16  ;;  %v2970_v3 = vmax.f32 %v2938_v34, 0.0  ;;  %v2971_v28 = vmax.f32 %v2939_v30, 0.0  ;;  %v2972_v9 = vmax.f32 %v2940_v47, 0.0  ;;  %v2973_v20 = vmax.f32 %v2941_v13, 0.0 }
 0x51c   : > { %2994 = vst [vmem:[%s5573_s21 + $0x20] sm:$0xff] %v2962_v5  ;;  %2995 = vst [vmem:[%s5573_s21 + $0x28] sm:$0xff] %v2963_v35  ;;  %v2974_v44 = vmax.f32 %v5541_v19, 0.0  ;;  %v2975_v58 = vmax.f32 %v5543_v10, 0.0  ;;  %v2976_v23 = vmax.f32 %v5545_v1, 0.0  ;;  %v2977_v4 = vmax.f32 %v5547_v2, 0.0 }
 0x51d   : > { %2996 = vst [vmem:[%s5573_s21 + $0x30] sm:$0xff] %v2964_v43  ;;  %2997 = vst [vmem:[%s5573_s21 + $0x38] sm:$0xff] %v2965_v31  ;;  %v2978_v8 = vmax.f32 %v5549_v39, 0.0  ;;  %v2979_v24 = vmax.f32 %v5551_v45, 0.0  ;;  %v2980_v22 = vmax.f32 %v5553_v53, 0.0  ;;  %v2981_v50 = vmax.f32 %v5555_v7, 0.0 }
 0x51e   : > { %2998 = vst [vmem:[%s5573_s21 + $0x40] sm:$0xff] %v2966_v61  ;;  %2999 = vst [vmem:[%s5573_s21 + $0x48] sm:$0xff] %v2967_v38  ;;  %v2982_v32 = vmax.f32 %v5557_v33, 0.0  ;;  %v2983_v57 = vmax.f32 %v5559_v14, 0.0  ;;  %v2984_v29 = vmax.f32 %v5561_v12, 0.0  ;;  %v2985_v21 = vmax.f32 %v5563_v41, 0.0 }
 0x51f   : > { %3000 = vst [vmem:[%s5573_s21 + $0x50] sm:$0xff] %v2968_v54  ;;  %3001 = vst [vmem:[%s5573_s21 + $0x58] sm:$0xff] %v2969_v6  ;;  %v2986_v46 = vmax.f32 %v5565_v62, 0.0  ;;  %v2987_v25 = vmax.f32 %v5567_v59, 0.0  ;;  %v2988_v55 = vmax.f32 %v5569_v27, 0.0  ;;  %v2989_v26 = vmax.f32 %v5571_v37, 0.0 }
 0x520   : > { %3002 = vst [vmem:[%s5573_s21 + $0x60] sm:$0xff] %v2970_v3  ;;  %3003 = vst [vmem:[%s5573_s21 + $0x68] sm:$0xff] %v2971_v28 }
 0x521   : > { %3004 = vst [vmem:[%s5573_s21 + $0x70] sm:$0xff] %v2972_v9  ;;  %3005 = vst [vmem:[%s5573_s21 + $0x78] sm:$0xff] %v2973_v20 }
 0x522   : > { %3006 = vst [vmem:[%s5573_s21 + $0x80] sm:$0xff] %v2974_v44  ;;  %3007 = vst [vmem:[%s5573_s21 + $0x88] sm:$0xff] %v2975_v58 }
 0x523   : > { %3008 = vst [vmem:[%s5573_s21 + $0x90] sm:$0xff] %v2976_v23  ;;  %3009 = vst [vmem:[%s5573_s21 + $0x98] sm:$0xff] %v2977_v4 }
 0x524   : > { %3010 = vst [vmem:[%s5573_s21 + $0xa0] sm:$0xff] %v2978_v8  ;;  %3011 = vst [vmem:[%s5573_s21 + $0xa8] sm:$0xff] %v2979_v24 }
 0x525   : > { %3012 = vst [vmem:[%s5573_s21 + $0xb0] sm:$0xff] %v2980_v22  ;;  %3013 = vst [vmem:[%s5573_s21 + $0xb8] sm:$0xff] %v2981_v50 }
 0x526   : > { %3014 = vst [vmem:[%s5573_s21 + $0xc0] sm:$0xff] %v2982_v32  ;;  %3015 = vst [vmem:[%s5573_s21 + $0xc8] sm:$0xff] %v2983_v57 }
 0x527   : > { %3016 = vst [vmem:[%s5573_s21 + $0xd0] sm:$0xff] %v2984_v29  ;;  %3017 = vst [vmem:[%s5573_s21 + $0xd8] sm:$0xff] %v2985_v21 }
 0x528   : > { %3018 = vst [vmem:[%s5573_s21 + $0xe0] sm:$0xff] %v2986_v46  ;;  %3019 = vst [vmem:[%s5573_s21 + $0xe8] sm:$0xff] %v2987_v25 }
 0x529   : > { %3020 = vst [vmem:[%s5573_s21 + $0xf0] sm:$0xff] %v2988_v55  ;;  %3021 = vst [vmem:[%s5573_s21 + $0xf8] sm:$0xff] %v2989_v26 }
 0x52a   : > { %4227 = shalt.err (!%p4224_p3)
}
 0x52b   : > { %s4228_s17 = scalar_lea.hbm %s5612_s22, 4096  ;;  %s4232_s20 = scalar_lea.hbm %s5682_s7, 8192 }
 0x52c   : > { %p4229_p4 = scmp.ne.s32.totalorder %s5612_s22, %s4228_s17  ;;  %p4233_p9 = scmp.lt.u32.totalorder %s5612_s22, %s5682_s7 }
 0x52d   : > { %p4234_p10 = scmp.lt.u32.totalorder %s4232_s20, %s4228_s17  ;;  %p4236_p12 = scmp.lt.u32.totalorder %s4228_s17, %s5612_s22 }
 0x52e   : > { %p4230_p7 = pnand %p4229_p4, %p4362_p5 }
 0x52f   : > { %p4235_p11 = por %p4234_p10, %p4233_p9 }
 0x530   : > { %p4231_p8 = pneg %p4230_p7 }
 0x531   : > { %p4237_p13 = por %p4236_p12, %p4235_p11 }
 0x533   : > { %p4238_p0 = pnand %p4237_p13, %p4231_p8 }
 0x535   : > { %4241 = shalt.err (!%p4238_p0)
}
 0x536   : > { %s4282_s28 = smov 128   ;;  %s4283_s29 = smov 8  }
 0x537   : > { %4096 = dma.vmem_to_hbm [thread:$0]  (%p4362_p5), %s5614_s19, 4096, %s5612_s22, %s5634_s8, %s4282_s28, %s4282_s28, %s4283_s29  }
 0x538 PF: > { %p4102_p1 = scmp.ge.s32.totalorder %s4276_s27, 2  ;;  %s3051_s9 = sand.u32 1, %s4264_s24  }
 0x539   : > { %s3052_s14 = scalar_lea.sflag [#allocation4], %s3051_s9 }
 0x53a   : > { %p4099_p2 = pnand %p4102_p1, %p4366_p6 }
 0x53c   : > { %4259 = dma.done.wait (!%p4099_p2), %s3052_s14, 4096  }
 0x53d   : > { %4261 = vsyncadd (!%p4099_p2), %s3052_s14, 4294963200  ;;  %p17_p3 = scmp.ge.s32.totalorder %s4349_s30, 4   ;;  %s5685_s24 = smov %s4268_s25 }
 0x53e   : > { %s5686_s25 = smov %s4272_s26  ;;  %s5687_s26 = smov %s4360_s10 }
 0x53f   : > { %s5688_s27 = smov %s4349_s30  ;;  %19 = sbr.rel (!%p17_p3) target bundleno = 3 (0x3), region = 85 }
 0x546   :  { %3057 = vsyncpa [#allocation4], 1 }
 0x547   :  { %3059 = vsyncpa [#allocation4 + $0x1], 1 }

</bundles_post_ra>
